<compile_context>
chip_gen: v7x
topology: tpu7x:2x2x1
jax: 0.10.0
libtpu: 0.0.40
codegen_flags: <defaults>
</compile_context>

<pallas_src>
import math

import jax
import jax.numpy as jnp
from jax.experimental import pallas as pl
from jax.experimental.pallas import tpu as pltpu


def _cdiv(a, b):
    return (a + b - 1) // b


def _round_up(x, m):
    return _cdiv(x, m) * m


# ----------------------------------------------------------------------------
# Kernels
# ----------------------------------------------------------------------------
def _conv_body(a_ref, w_ref, o_ref):
    # a_ref / w_ref: (C, TR, LANE) VMEM tiles; o_ref: (TR, LANE).
    w = w_ref[...].astype(jnp.float32)
    # Numerically stable softmax over the channel axis (leading axis 0:
    # register-split reduction -> pure VPU work, no cross-sublane XLU).
    m = jnp.max(w, axis=0, keepdims=True)
    e = jnp.exp(w - m)
    s = jnp.sum(e, axis=0, keepdims=True)
    p = e / s  # exact reciprocal: kernel is HBM-bound, the divide is free
    a = a_ref[...].astype(jnp.float32)
    o_ref[...] = jnp.sum(a * p, axis=0).astype(o_ref.dtype)


def _gtconv_kernel(a_ref, w_ref, o_ref):
    _conv_body(a_ref, w_ref, o_ref)


def _gtlayer_fused_kernel(au_ref, wu_ref, ae_ref, we_ref, ou_ref, oe_ref):
    _conv_body(au_ref, wu_ref, ou_ref)
    _conv_body(ae_ref, we_ref, oe_ref)


# ----------------------------------------------------------------------------
# Planning helpers
# ----------------------------------------------------------------------------
def _hw_info():
    """(vmem_capacity_bytes, has_two_tensorcores) with safe fallbacks."""
    vmem_cap = 64 << 20  # conservative default (v7x per-TensorCore VMEM)
    two_cores = False
    try:
        info = pltpu.get_tpu_info()
        vmem_cap = int(getattr(info, "vmem_capacity_bytes", vmem_cap))
    except Exception:
        pass
    try:
        kind = jax.devices()[0].device_kind.lower()
        two_cores = "7" in kind  # v7x: 2 TensorCores per chip
    except Exception:
        pass
    return vmem_cap, two_cores


def _plan_tiling(n_elems, channels, elem_bytes, n_views, sub, vmem_cap, two_cores):
    """Pick (lane, row_tile, grid, rows, vmem_limit) for a (C, n_elems) problem."""
    # Lane: widest multiple of 128 (<= 512) that divides n exactly, so the
    # flatten reshape is a free bitcast and no pad/slice copy is ever emitted.
    lane = None
    for cand in (512, 384, 256, 128):
        if n_elems % cand == 0:
            lane = cand
            break
    if lane is None:
        lane = 512
        while lane > 128 and _cdiv(n_elems, lane) < 8:
            lane -= 128
    rows = _cdiv(n_elems, lane)

    # Generation-aware VMEM budget (big streaming tiles; per-step overhead is
    # ~0.35 us, so tiles of ~hundreds of rows keep overhead to a few percent).
    if vmem_cap >= (100 << 20):       # v5e / v6e: 128 MiB physical VMEM
        target, vmem_limit = 80 << 20, 96 << 20
    else:                             # v7x: 64 MiB per TensorCore
        target, vmem_limit = 40 << 20, 48 << 20

    # Double-buffered working set per tile row:
    #   2 bufs x (2*n_views inputs x C + n_views outputs) x lane x elem_bytes
    bytes_per_row = 2 * lane * elem_bytes * n_views * (2 * channels + 1)
    tr = max(sub, (target // bytes_per_row) // sub * sub)

    # Megacore: on 2-TC chips keep >= 4 grid steps (>= 2 per core) when rows
    # allow, so each core's software pipeline has something to prefetch.  On
    # single-TC chips let small problems run as one big tile (no forced split).
    min_steps = 4 if two_cores else 1
    if min_steps > 1 and rows >= min_steps * sub * 2:
        tr = min(tr, max(sub, _round_up(_cdiv(rows, min_steps), sub)))
    tr = min(tr, _round_up(rows, sub))

    grid = _cdiv(rows, tr)
    return lane, tr, grid, rows, vmem_limit


def _flatten_lane_dense(x, channels, rows, lane):
    flat = x.reshape(channels, -1)
    pad = rows * lane - flat.shape[1]
    if pad:
        # Ragged tail only.  Zero padding is safe: softmax over C of zeros is
        # finite (1/C) and is multiplied by zero-padded A, so padded outputs
        # are 0 and sliced off afterwards.
        flat = jnp.pad(flat, ((0, 0), (0, pad)))
    return flat.reshape(channels, rows, lane)


def _unflatten(out, n, shape):
    if out.size == n:            # common path: free reshape, no slice copy
        return out.reshape(shape)
    return out.reshape(-1)[:n].reshape(shape)


def _launch(kernel, inputs, out_dtypes, C, rows, lane, tr, grid, vmem_limit):
    in_spec = pl.BlockSpec((C, tr, lane), lambda i: (0, i, 0))
    out_spec = pl.BlockSpec((tr, lane), lambda i: (i, 0))
    out_shape = tuple(jax.ShapeDtypeStruct((rows, lane), dt) for dt in out_dtypes)
    return pl.pallas_call(
        kernel,
        out_shape=out_shape,
        grid_spec=pltpu.PrefetchScalarGridSpec(
            num_scalar_prefetch=0,
            grid=(grid,),
            in_specs=[in_spec] * len(inputs),
            out_specs=[out_spec] * len(out_dtypes),
        ),
        compiler_params=pltpu.CompilerParams(
            dimension_semantics=("parallel",),
            vmem_limit_bytes=vmem_limit,
        ),
    )(*inputs)


def _dtype_meta(arrs):
    sizes = [jnp.dtype(a.dtype).itemsize for a in arrs]
    elem_bytes = max(sizes)
    sub = 16 if min(sizes) < 4 else 8   # bf16 sublane packing needs 16-row tiles
    return elem_bytes, sub


# ----------------------------------------------------------------------------
# Public forward functions
# ----------------------------------------------------------------------------
def gtconv_forward(A, weight, hw=None):
    """Single GTConv forward: sum_C(A * softmax(weight, dim=C))."""
    assert weight.shape[0] == 1, "GTConv forward assumes out_channels == 1"
    C = A.shape[0]
    assert weight.shape[1] == C
    n = math.prod(A.shape[1:])
    hw = hw if hw is not None else _hw_info()

    elem_bytes, sub = _dtype_meta((A, weight))
    lane, tr, grid, rows, vmem_limit = _plan_tiling(n, C, elem_bytes, 1, sub, *hw)

    a = _flatten_lane_dense(A, C, rows, lane)
    w = _flatten_lane_dense(weight[0], C, rows, lane)
    (out,) = _launch(_gtconv_kernel, (a, w), (A.dtype,),
                     C, rows, lane, tr, grid, vmem_limit)
    return _unflatten(out, n, A.shape[1:])


def gtlayer_forward(A_user, w_user, A_event, w_event):
    """Fused Pallas implementation of GTLayer.forward (both GTConvs)."""
    assert w_user.shape[0] == 1 and w_event.shape[0] == 1, (
        "GTConv forward assumes out_channels == 1 (squeeze dim=0)")
    C = A_user.shape[0]
    assert A_event.shape[0] == C
    assert w_user.shape[1] == C and w_event.shape[1] == C

    n_u = math.prod(A_user.shape[1:])
    n_e = math.prod(A_event.shape[1:])
    hw = _hw_info()

    if n_u != n_e:
        # Different element counts: tile each view on its own grid rather than
        # padding the smaller view to the larger (saves HBM bandwidth).
        return (gtconv_forward(A_user, w_user, hw=hw),
                gtconv_forward(A_event, w_event, hw=hw))

    elem_bytes, sub = _dtype_meta((A_user, w_user, A_event, w_event))
    lane, tr, grid, rows, vmem_limit = _plan_tiling(
        n_u, C, elem_bytes, 2, sub, *hw)

    au = _flatten_lane_dense(A_user, C, rows, lane)
    wu = _flatten_lane_dense(w_user[0], C, rows, lane)
    ae = _flatten_lane_dense(A_event, C, rows, lane)
    we = _flatten_lane_dense(w_event[0], C, rows, lane)

    out_u, out_e = _launch(_gtlayer_fused_kernel, (au, wu, ae, we),
                           (A_user.dtype, A_event.dtype),
                           C, rows, lane, tr, grid, vmem_limit)
    return (_unflatten(out_u, n_u, A_user.shape[1:]),
            _unflatten(out_e, n_e, A_event.shape[1:]))


class GTLayerPallas:
    """JAX/Pallas mirror of the PyTorch GTLayer (out_channels must be 1)."""

    def __init__(self, in_channels, out_channels, num_dim, num_user, num_item):
        self.in_channels = in_channels
        self.out_channels = out_channels
        self.num_dim = num_dim
        self.num_user = num_user
        self.num_item = num_item
        # Deterministic init per GTConv.reset_parameters: constant 0.1.
        self.w_user = jnp.full(
            (out_channels, in_channels, num_user, num_item, num_dim),
            0.1, dtype=jnp.float32)
        self.w_event = jnp.full(
            (out_channels, in_channels, num_item, num_user, num_dim),
            0.1, dtype=jnp.float32)
        # `scale` exists on the PyTorch module but is unused in forward.

    def __call__(self, A_user, A_event):
        return gtlayer_forward(A_user, self.w_user, A_event, self.w_event)


def _reference_gtconv(A, weight):
    # Pure-JAX reference of the PyTorch semantics.
    p = jax.nn.softmax(weight, axis=1)           # softmax over in_channels
    x = jnp.squeeze(A[None] * p, axis=0)         # (C, S0, S1, D)
    return jnp.sum(x, axis=0)                    # (S0, S1, D)


if __name__ == "__main__":
    in_channels = 4
    out_channels = 1
    num_dim = 32
    num_user = 16
    num_item = 8

    key = jax.random.PRNGKey(0)
    k1, k2, k3, k4 = jax.random.split(key, 4)
    A_user = jax.random.normal(
        k1, (in_channels, num_user, num_item, num_dim), dtype=jnp.float32)
    A_event = jax.random.normal(
        k2, (in_channels, num_item, num_user, num_dim), dtype=jnp.float32)

    layer = GTLayerPallas(in_channels, out_channels, num_dim, num_user, num_item)
    # The module's reset_parameters gives constant-0.1 weights (softmax == 1/C
    # everywhere); use random weights here for a stronger correctness check.
    layer.w_user = jax.random.normal(k3, layer.w_user.shape, dtype=jnp.float32)
    layer.w_event = jax.random.normal(k4, layer.w_event.shape, dtype=jnp.float32)

    fwd = jax.jit(gtlayer_forward)
    out_user, out_event = fwd(A_user, layer.w_user, A_event, layer.w_event)
    jax.block_until_ready(out_user)
    jax.block_until_ready(out_event)

    # Correctness check against a pure-JAX reference (exact softmax reciprocal
    # in-kernel -> tight tolerance).
    ref_user = _reference_gtconv(A_user, layer.w_user)
    ref_event = _reference_gtconv(A_event, layer.w_event)
    assert jnp.allclose(out_user, ref_user, atol=1e-5, rtol=1e-5)
    assert jnp.allclose(out_event, ref_event, atol=1e-5, rtol=1e-5)

    print("KERNEL_OK")
</pallas_src>

<mosaic_0001>
module attributes {stable_mosaic.version = 11 : i64} {
  func.func @_gtlayer_fused_kernel(%arg0: i32, %arg1: memref<4x8x512xf32, #tpu.memory_space<vmem>>, %arg2: memref<4x8x512xf32, #tpu.memory_space<vmem>>, %arg3: memref<4x8x512xf32, #tpu.memory_space<vmem>>, %arg4: memref<4x8x512xf32, #tpu.memory_space<vmem>>, %arg5: memref<8x512xf32, #tpu.memory_space<vmem>>, %arg6: memref<8x512xf32, #tpu.memory_space<vmem>>) attributes {dimension_semantics = [#tpu.dimension_semantics<parallel>], iteration_bounds = array<i64: 1>, scalar_prefetch = 0 : i64, scratch_operands = 0 : i64, tpu.core_type = #tpu.core_type<tc>, window_params = [{transform_indices = @transform_0, window_bounds = array<i64: 4, 8, 512>}, {transform_indices = @transform_1, window_bounds = array<i64: 4, 8, 512>}, {transform_indices = @transform_2, window_bounds = array<i64: 4, 8, 512>}, {transform_indices = @transform_3, window_bounds = array<i64: 4, 8, 512>}, {transform_indices = @transform_4, window_bounds = array<i64: 8, 512>}, {transform_indices = @transform_5, window_bounds = array<i64: 8, 512>}]} {
    %c0 = arith.constant 0 : index
    %c0_0 = arith.constant 0 : index
    %c0_1 = arith.constant 0 : index
    %0 = vector.load %arg2[%c0, %c0_0, %c0_1] : memref<4x8x512xf32, #tpu.memory_space<vmem>>, vector<4x8x512xf32>
    %cst = arith.constant dense<0xFF800000> : vector<8x512xf32>
    %1 = vector.multi_reduction <maximumf>, %0, %cst [0] : vector<4x8x512xf32> to vector<8x512xf32>
    %2 = vector.shape_cast %1 : vector<8x512xf32> to vector<1x8x512xf32>
    %3 = vector.broadcast %2 : vector<1x8x512xf32> to vector<4x8x512xf32>
    %4 = arith.subf %0, %3 : vector<4x8x512xf32>
    %5 = math.exp %4 : vector<4x8x512xf32>
    %cst_2 = arith.constant dense<0.000000e+00> : vector<8x512xf32>
    %6 = vector.multi_reduction <add>, %5, %cst_2 [0] : vector<4x8x512xf32> to vector<8x512xf32>
    %7 = vector.shape_cast %6 : vector<8x512xf32> to vector<1x8x512xf32>
    %8 = vector.broadcast %7 : vector<1x8x512xf32> to vector<4x8x512xf32>
    %9 = arith.divf %5, %8 : vector<4x8x512xf32>
    %c0_3 = arith.constant 0 : index
    %c0_4 = arith.constant 0 : index
    %c0_5 = arith.constant 0 : index
    %10 = vector.load %arg1[%c0_3, %c0_4, %c0_5] : memref<4x8x512xf32, #tpu.memory_space<vmem>>, vector<4x8x512xf32>
    %11 = arith.mulf %10, %9 : vector<4x8x512xf32>
    %cst_6 = arith.constant dense<0.000000e+00> : vector<8x512xf32>
    %12 = vector.multi_reduction <add>, %11, %cst_6 [0] : vector<4x8x512xf32> to vector<8x512xf32>
    %c0_7 = arith.constant 0 : index
    %c0_8 = arith.constant 0 : index
    %13 = vector.load %arg5[%c0_7, %c0_8] : memref<8x512xf32, #tpu.memory_space<vmem>>, vector<8x512xf32>
    tpu.vector_store %arg5[%c0_7, %c0_8], %12 {strides = array<i32>} : memref<8x512xf32, #tpu.memory_space<vmem>>, vector<8x512xf32>,
    %c0_9 = arith.constant 0 : index
    %c0_10 = arith.constant 0 : index
    %c0_11 = arith.constant 0 : index
    %14 = vector.load %arg4[%c0_9, %c0_10, %c0_11] : memref<4x8x512xf32, #tpu.memory_space<vmem>>, vector<4x8x512xf32>
    %cst_12 = arith.constant dense<0xFF800000> : vector<8x512xf32>
    %15 = vector.multi_reduction <maximumf>, %14, %cst_12 [0] : vector<4x8x512xf32> to vector<8x512xf32>
    %16 = vector.shape_cast %15 : vector<8x512xf32> to vector<1x8x512xf32>
    %17 = vector.broadcast %16 : vector<1x8x512xf32> to vector<4x8x512xf32>
    %18 = arith.subf %14, %17 : vector<4x8x512xf32>
    %19 = math.exp %18 : vector<4x8x512xf32>
    %cst_13 = arith.constant dense<0.000000e+00> : vector<8x512xf32>
    %20 = vector.multi_reduction <add>, %19, %cst_13 [0] : vector<4x8x512xf32> to vector<8x512xf32>
    %21 = vector.shape_cast %20 : vector<8x512xf32> to vector<1x8x512xf32>
    %22 = vector.broadcast %21 : vector<1x8x512xf32> to vector<4x8x512xf32>
    %23 = arith.divf %19, %22 : vector<4x8x512xf32>
    %c0_14 = arith.constant 0 : index
    %c0_15 = arith.constant 0 : index
    %c0_16 = arith.constant 0 : index
    %24 = vector.load %arg3[%c0_14, %c0_15, %c0_16] : memref<4x8x512xf32, #tpu.memory_space<vmem>>, vector<4x8x512xf32>
    %25 = arith.mulf %24, %23 : vector<4x8x512xf32>
    %cst_17 = arith.constant dense<0.000000e+00> : vector<8x512xf32>
    %26 = vector.multi_reduction <add>, %25, %cst_17 [0] : vector<4x8x512xf32> to vector<8x512xf32>
    %c0_18 = arith.constant 0 : index
    %c0_19 = arith.constant 0 : index
    %27 = vector.load %arg6[%c0_18, %c0_19] : memref<8x512xf32, #tpu.memory_space<vmem>>, vector<8x512xf32>
    tpu.vector_store %arg6[%c0_18, %c0_19], %26 {strides = array<i32>} : memref<8x512xf32, #tpu.memory_space<vmem>>, vector<8x512xf32>,
    return
  }
  func.func @transform_0(%arg0: i32) -> (i32, i32, i32) {
    %c0_i32 = arith.constant 0 : i32
    %c0_i32_0 = arith.constant 0 : i32
    %c0_i32_1 = arith.constant 0 : i32
    return %c0_i32, %arg0, %c0_i32_0 : i32, i32, i32
  }
  func.func @transform_1(%arg0: i32) -> (i32, i32, i32) {
    %c0_i32 = arith.constant 0 : i32
    %c0_i32_0 = arith.constant 0 : i32
    %c0_i32_1 = arith.constant 0 : i32
    return %c0_i32, %arg0, %c0_i32_0 : i32, i32, i32
  }
  func.func @transform_2(%arg0: i32) -> (i32, i32, i32) {
    %c0_i32 = arith.constant 0 : i32
    %c0_i32_0 = arith.constant 0 : i32
    %c0_i32_1 = arith.constant 0 : i32
    return %c0_i32, %arg0, %c0_i32_0 : i32, i32, i32
  }
  func.func @transform_3(%arg0: i32) -> (i32, i32, i32) {
    %c0_i32 = arith.constant 0 : i32
    %c0_i32_0 = arith.constant 0 : i32
    %c0_i32_1 = arith.constant 0 : i32
    return %c0_i32, %arg0, %c0_i32_0 : i32, i32, i32
  }
  func.func @transform_4(%arg0: i32) -> (i32, i32) {
    %c0_i32 = arith.constant 0 : i32
    %c0_i32_0 = arith.constant 0 : i32
    return %arg0, %c0_i32 : i32, i32
  }
  func.func @transform_5(%arg0: i32) -> (i32, i32) {
    %c0_i32 = arith.constant 0 : i32
    %c0_i32_0 = arith.constant 0 : i32
    return %arg0, %c0_i32 : i32, i32
  }
}

</mosaic_0001>

<bundles_post_ra>
// kernel: squeeze.3
= control target key start
LH: loop header
LB: loop body
LE: loop exit
PB: predicated region body
PF: predicated region fallthrough
CT: control target
= control target key end

     0   :  { %vm118_vm0 = vcmask 1043458   ;;  %s158_s6 = smov 3  ;;  %vm123_vm1 = vcmask 1045508   ;;  %vm128_vm2 = vcmask 1047558   ;;  %s161_s9 = smov 12  ;;  %vm3_vm3 = vcmask 261120   ;;  %s2648_s0 = inlined_call_operand.vmem [shape: f32[1,4,8,16,32], index: 0, kind: input, shape index: {}]   ;;  %s2649_s1 = inlined_call_operand.vmem [shape: f32[4,8,512], index: 1, kind: output, shape index: {}]  }
   0x1   :  { %v1268_v0 = vld [vmem:[%s2648_s0 + $0x103] ss:$16 sm:%s158_s6]   ;;  %s166_s10 = smov 48  ;;  %s171_s15 = smov 192  ;;  %v1223_v54 = vld [vmem:[%s2648_s0 + $0x80] ss:$4 sm:$0xff]  }
   0x2   :  { %v1269_v1 = vld [vmem:[%s2648_s0 + $0x103] ss:$16 sm:%s161_s9]   ;;  %s113_s16 = smov 3  ;;  %s116_s21 = smov 12  ;;  %vm132_vm4 = vcmask 1048320   ;;  %vm499_vm5 = vcmask 785920  }
   0x3   :  { %v1270_v2 = vld [vmem:[%s2648_s0 + $0x103] ss:$16 sm:%s166_s10]   ;;  %v164_v3 = vsel %vm118_vm0, %v1269_v1, %v1268_v0  ;;  %s121_s22 = smov 48  ;;  %s126_s27 = smov 192  ;;  %v1226_v0 = vld [vmem:[%s2648_s0 + $0xa0] ss:$4 sm:$0xff]  }
   0x4   :  { %v1271_v4 = vld [vmem:[%s2648_s0 + $0x103] ss:$16 sm:%s171_s15]   ;;  %v169_v6 = vsel %vm123_vm1, %v1270_v2, %v164_v3  ;;  %s181_s28 = smov 3  ;;  %s184_s4 = smov 12  ;;  %vm866_vm6 = vcmask 523520  }
   0x5   :  { %v1259_v5 = vld [vmem:[%s2648_s0 + $0x3] ss:$16 sm:%s113_s16]   ;;  %v174_v9 = vsel %vm128_vm2, %v1271_v4, %v169_v6  ;;  %s189_s5 = smov 48  ;;  %s1499_s6 = smov 96   ;;  %v1229_v6 = vld [vmem:[%s2648_s0 + $0xc0] ss:$4 sm:$0xff]  }
   0x6   :  { %v1260_v7 = vld [vmem:[%s2648_s0 + $0x3] ss:$16 sm:%s116_s21]   ;;  %175 = vrot.lane.b32.xlu1 %v174_v9, %s1499_s6  ;;  %s194_s9 = smov 192  ;;  %s135_s10 = smov 3 }
   0x7   :  { %v1261_v8 = vld [vmem:[%s2648_s0 + $0x3] ss:$16 sm:%s121_s22]   ;;  %v119_v10 = vsel %vm118_vm0, %v1260_v7, %v1259_v5  ;;  %s138_s15 = smov 12  ;;  %s143_s16 = smov 48 }
   0x8   :  { %v1262_v11 = vld [vmem:[%s2648_s0 + $0x3] ss:$16 sm:%s126_s27]   ;;  %v124_v13 = vsel %vm123_vm1, %v1261_v8, %v119_v10  ;;  %s148_s19 = smov 192  ;;  %s227_s20 = smov 3 }
   0x9   :  { %v1273_v12 = vld [vmem:[%s2648_s0 + $0x183] ss:$16 sm:%s181_s28]   ;;  %v129_v15 = vsel %vm128_vm2, %v1262_v11, %v124_v13  ;;  %s230_s25 = smov 12  ;;  %s235_s26 = smov 48  ;;  %v1283_v27 = vld [vmem:[%s2648_s0 + $0x87] ss:$16 sm:%s227_s20]  }
   0xa   :  { %v1274_v14 = vld [vmem:[%s2648_s0 + $0x183] ss:$16 sm:%s184_s4]   ;;  %130 = vrot.lane.b32.xlu0 %v129_v15, %s1499_s6  ;;  %s240_s29 = smov 192  ;;  %s204_s30 = smov 3 }
   0xb   :  { %v187_v16 = vsel %vm118_vm0, %v1274_v14, %v1273_v12  ;;  %v1275_v17 = vld [vmem:[%s2648_s0 + $0x183] ss:$16 sm:%s189_s5]   ;;  %v1284_v28 = vld [vmem:[%s2648_s0 + $0x87] ss:$16 sm:%s230_s25]   ;;  %s207_s7 = smov 12  ;;  %s212_s8 = smov 48 }
   0xc   :  { %v1276_v18 = vld [vmem:[%s2648_s0 + $0x183] ss:$16 sm:%s194_s9]   ;;  %v192_v19 = vsel %vm123_vm1, %v1275_v17, %v187_v16  ;;  %v233_v30 = vsel %vm118_vm0, %v1284_v28, %v1283_v27  ;;  %v1285_v31 = vld [vmem:[%s2648_s0 + $0x87] ss:$16 sm:%s235_s26]   ;;  %s217_s13 = smov 192  ;;  %s276_s17 = smov 12 }
   0xd   :  { %v1263_v20 = vld [vmem:[%s2648_s0 + $0x83] ss:$16 sm:%s135_s10]   ;;  %v197_v21 = vsel %vm128_vm2, %v1276_v18, %v192_v19  ;;  %v1286_v32 = vld [vmem:[%s2648_s0 + $0x87] ss:$16 sm:%s240_s29]   ;;  %v238_v33 = vsel %vm123_vm1, %v1285_v31, %v233_v30  ;;  %s281_s22 = smov 48  ;;  %s286_s23 = smov 192 }
   0xe   :  { %v1264_v22 = vld [vmem:[%s2648_s0 + $0x83] ss:$16 sm:%s138_s15]   ;;  %198 = vrot.lane.b32.xlu1 %v197_v21, %s1499_s6  ;;  %v243_v35 = vsel %vm128_vm2, %v1286_v32, %v238_v33  ;;  %s250_s26 = smov 3  ;;  %s253_s2 = smov 12  ;;  %v1232_v16 = vld [vmem:[%s2648_s0 + $0xe0] ss:$4 sm:$0xff]  }
   0xf   :  { %v1265_v23 = vld [vmem:[%s2648_s0 + $0x83] ss:$16 sm:%s143_s16]   ;;  %v141_v24 = vsel %vm118_vm0, %v1264_v22, %v1263_v20  ;;  %v1278_v34 = vld [vmem:[%s2648_s0 + $0x7] ss:$16 sm:%s204_s30]   ;;  %s273_s16 = smov 3  ;;  %s258_s3 = smov 48 }
  0x10   :  { %v1266_v25 = vld [vmem:[%s2648_s0 + $0x83] ss:$16 sm:%s148_s19]   ;;  %v146_v26 = vsel %vm123_vm1, %v1265_v23, %v141_v24  ;;  %v1279_v36 = vld [vmem:[%s2648_s0 + $0x7] ss:$16 sm:%s207_s7]   ;;  %s263_s9 = smov 192  ;;  %s319_s12 = smov 3 }
  0x11   :  { %v151_v29 = vsel %vm128_vm2, %v1266_v25, %v146_v26  ;;  %v1280_v37 = vld [vmem:[%s2648_s0 + $0x7] ss:$16 sm:%s212_s8]   ;;  %v210_v38 = vsel %vm118_vm0, %v1279_v36, %v1278_v34  ;;  %s327_s18 = smov 48  ;;  %s332_s19 = smov 192  ;;  %v1303_v56 = vld [vmem:[%s2648_s0 + $0x8b] ss:$16 sm:%s319_s12]  }
  0x12   :  { %152 = vrot.lane.b32.xlu0 %v151_v29, %s1499_s6  ;;  %244 = vrot.lane.b32.xlu1 %v243_v35, %s1499_s6  ;;  %v1281_v39 = vld [vmem:[%s2648_s0 + $0x7] ss:$16 sm:%s217_s13]   ;;  %v215_v40 = vsel %vm123_vm1, %v1280_v37, %v210_v38  ;;  %s322_s13 = smov 12  ;;  %s299_s29 = smov 12 }
  0x13   :  { %v1293_v41 = vld [vmem:[%s2648_s0 + $0x187] ss:$16 sm:%s273_s16]   ;;  %v220_v43 = vsel %vm128_vm2, %v1281_v39, %v215_v40  ;;  %v1304_v57 = vld [vmem:[%s2648_s0 + $0x8b] ss:$16 sm:%s322_s13]   ;;  %s304_s30 = smov 48  ;;  %s309_s11 = smov 192 }
  0x14   :  { %v1294_v42 = vld [vmem:[%s2648_s0 + $0x187] ss:$16 sm:%s276_s17]   ;;  %1224 = vst.msk [vmem:[%s2649_s1 + $0x20] ss:$8 sm:$0xf] %vm3_vm3, %v1223_v54   ;;  %v325_v59 = vsel %vm118_vm0, %v1304_v57, %v1303_v56  ;;  %s365_s14 = smov 3 }
  0x15   :  { %v279_v44 = vsel %vm118_vm0, %v1294_v42, %v1293_v41  ;;  %v1295_v45 = vld [vmem:[%s2648_s0 + $0x187] ss:$16 sm:%s281_s22]   ;;  %s296_s22 = smov 3  ;;  %1225 = vst.msk [vmem:[%s2649_s1 + $0x1] ss:$8 sm:$0xf0] %vm3_vm3, %v1223_v54  }
  0x16   :  { %v1296_v46 = vld [vmem:[%s2648_s0 + $0x187] ss:$16 sm:%s286_s23]   ;;  %221 = vrot.lane.b32.xlu0 %v220_v43, %s1499_s6  ;;  %v284_v47 = vsel %vm123_vm1, %v1295_v45, %v279_v44  ;;  %s368_s15 = smov 12  ;;  %s378_s23 = smov 192  ;;  %v2_v31 = vld [vmem:[%s2648_s0] ss:$4 sm:$0xff]  }
  0x17   :  { %v1288_v48 = vld [vmem:[%s2648_s0 + $0x107] ss:$16 sm:%s250_s26]   ;;  %v289_v49 = vsel %vm128_vm2, %v1296_v46, %v284_v47  ;;  %v1305_v60 = vld [vmem:[%s2648_s0 + $0x8b] ss:$16 sm:%s327_s18]   ;;  %s350_s10 = smov 48  ;;  %s396_s16 = smov 48 }
  0x18   :  { %v1289_v50 = vld [vmem:[%s2648_s0 + $0x107] ss:$16 sm:%s253_s2]   ;;  %290 = vrot.lane.b32.xlu1 %v289_v49, %s1499_s6  ;;  %v330_v62 = vsel %vm123_vm1, %v1305_v60, %v325_v59  ;;  %1227 = vst.msk [vmem:[%s2649_s1 + $0x22] ss:$8 sm:$0xf] %vm3_vm3, %v1226_v0   ;;  %s424_s2 = smov 192 }
  0x19   :  { %v1290_v51 = vld [vmem:[%s2648_s0 + $0x107] ss:$16 sm:%s258_s3]   ;;  %v256_v52 = vsel %vm118_vm0, %v1289_v50, %v1288_v48  ;;  %v1306_v61 = vld [vmem:[%s2648_s0 + $0x8b] ss:$16 sm:%s332_s19]   ;;  %s355_s19 = smov 192  ;;  %s401_s21 = smov 192 }
  0x1a   :  { %v1291_v53 = vld [vmem:[%s2648_s0 + $0x107] ss:$16 sm:%s263_s9]   ;;  %v261_v55 = vsel %vm123_vm1, %v1290_v51, %v256_v52  ;;  %v1298_v63 = vld [vmem:[%s2648_s0 + $0xb] ss:$16 sm:%s296_s22]   ;;  %v335_v1 = vsel %vm128_vm2, %v1306_v61, %v330_v62  ;;  %s373_s22 = smov 48  ;;  %s345_s9 = smov 12 }
  0x1b   :  { %v266_v58 = vsel %vm128_vm2, %v1291_v53, %v261_v55  ;;  %v1299_v2 = vld [vmem:[%s2648_s0 + $0xb] ss:$16 sm:%s299_s29]   ;;  %1228 = vst.msk [vmem:[%s2649_s1 + $0x3] ss:$8 sm:$0xf0] %vm3_vm3, %v1226_v0   ;;  %s457_s24 = smov 3 }
  0x1c   :  { %267 = vrot.lane.b32.xlu0 %v266_v58, %s1499_s6  ;;  %v1300_v3 = vld [vmem:[%s2648_s0 + $0xb] ss:$16 sm:%s304_s30]   ;;  %336 = vrot.lane.b32.xlu1 %v335_v1, %s1499_s6  ;;  %v302_v4 = vsel %vm118_vm0, %v1299_v2, %v1298_v63  ;;  %s342_s30 = smov 3  ;;  %s460_s25 = smov 12 }
  0x1d   :  { %v1301_v5 = vld [vmem:[%s2648_s0 + $0xb] ss:$16 sm:%s309_s11]   ;;  %v307_v7 = vsel %vm123_vm1, %v1300_v3, %v302_v4  ;;  %1230 = vst.msk [vmem:[%s2649_s1 + $0x24] ss:$8 sm:$0xf] %vm3_vm3, %v1229_v6   ;;  %s465_s3 = smov 48 }
  0x1e   :  { %v1313_v8 = vld [vmem:[%s2648_s0 + $0x18b] ss:$16 sm:%s365_s14]   ;;  %1231 = vst.msk [vmem:[%s2649_s1 + $0x5] ss:$8 sm:$0xf0] %vm3_vm3, %v1229_v6   ;;  %v312_v10 = vsel %vm128_vm2, %v1301_v5, %v307_v7  ;;  %s470_s4 = smov 192 }
  0x1f   :  { %v1314_v9 = vld [vmem:[%s2648_s0 + $0x18b] ss:$16 sm:%s368_s15]   ;;  %1233 = vst.msk [vmem:[%s2649_s1 + $0x26] ss:$8 sm:$0xf] %vm3_vm3, %v1232_v16   ;;  %s391_s15 = smov 12 }
  0x20   :  { %v371_v11 = vsel %vm118_vm0, %v1314_v9, %v1313_v8  ;;  %v1315_v12 = vld [vmem:[%s2648_s0 + $0x18b] ss:$16 sm:%s373_s22]   ;;  %313 = vrot.lane.b32.xlu0 %v312_v10, %s1499_s6  ;;  %s411_s22 = smov 3  ;;  %1234 = vst.msk [vmem:[%s2649_s1 + $0x7] ss:$8 sm:$0xf0] %vm3_vm3, %v1232_v16  }
  0x21   :  { %v1316_v13 = vld [vmem:[%s2648_s0 + $0x18b] ss:$16 sm:%s378_s23]   ;;  %v376_v14 = vsel %vm123_vm1, %v1315_v12, %v371_v11  ;;  %s414_s23 = smov 12  ;;  %v1323_v23 = vld [vmem:[%s2648_s0 + $0x8f] ss:$16 sm:%s411_s22]   ;;  %s434_s12 = smov 3 }
  0x22   :  { %v1308_v15 = vld [vmem:[%s2648_s0 + $0x10b] ss:$16 sm:%s342_s30]   ;;  %v381_v17 = vsel %vm128_vm2, %v1316_v13, %v376_v14  ;;  %s419_s30 = smov 48  ;;  %v1324_v24 = vld [vmem:[%s2648_s0 + $0x8f] ss:$16 sm:%s414_s23]   ;;  %s442_s20 = smov 48 }
  0x23   :  { %v1309_v18 = vld [vmem:[%s2648_s0 + $0x10b] ss:$16 sm:%s345_s9]   ;;  %382 = vrot.lane.b32.xlu1 %v381_v17, %s1499_s6  ;;  %v417_v26 = vsel %vm118_vm0, %v1324_v24, %v1323_v23  ;;  %4 = vst.msk [vmem:[%s2649_s1] ss:$8 sm:$0xf] %vm3_vm3, %v2_v31   ;;  %s447_s29 = smov 192 }
  0x24   :  { %v1310_v19 = vld [vmem:[%s2648_s0 + $0x10b] ss:$16 sm:%s350_s10]   ;;  %v348_v20 = vsel %vm118_vm0, %v1309_v18, %v1308_v15  ;;  %s388_s10 = smov 3  ;;  %v1325_v27 = vld [vmem:[%s2648_s0 + $0x8f] ss:$16 sm:%s419_s30]   ;;  %s515_s13 = smov 192 }
  0x25   :  { %v1311_v21 = vld [vmem:[%s2648_s0 + $0x10b] ss:$16 sm:%s355_s19]   ;;  %v353_v22 = vsel %vm123_vm1, %v1310_v19, %v348_v20  ;;  %v1326_v28 = vld [vmem:[%s2648_s0 + $0x8f] ss:$16 sm:%s424_s2]   ;;  %v422_v29 = vsel %vm123_vm1, %v1325_v27, %v417_v26  ;;  %s437_s19 = smov 12  ;;  %s483_s27 = smov 12 }
  0x26   :  { %v358_v25 = vsel %vm128_vm2, %v1311_v21, %v353_v22  ;;  %v1318_v30 = vld [vmem:[%s2648_s0 + $0xf] ss:$16 sm:%s388_s10]   ;;  %v427_v32 = vsel %vm128_vm2, %v1326_v28, %v422_v29  ;;  %1213 = vst.msk [vmem:[%s2649_s1 - $0x1f] ss:$8 sm:$0xf0] %vm3_vm3, %v2_v31   ;;  %s488_s28 = smov 48 }
  0x27   :  { %359 = vrot.lane.b32.xlu0 %v358_v25, %s1499_s6  ;;  %v1319_v33 = vld [vmem:[%s2648_s0 + $0xf] ss:$16 sm:%s391_s15]   ;;  %428 = vrot.lane.b32.xlu1 %v427_v32, %s1499_s6  ;;  %s493_s9 = smov 192  ;;  %s548_s11 = smov 3 }
  0x28   :  { %v1320_v34 = vld [vmem:[%s2648_s0 + $0xf] ss:$16 sm:%s396_s16]   ;;  %v394_v35 = vsel %vm118_vm0, %v1319_v33, %v1318_v30  ;;  %v1214_v37 = vld [vmem:[%s2648_s0 + $0x20] ss:$4 sm:$0xff]   ;;  %s528_s7 = smov 12  ;;  %s533_s8 = smov 48 }
  0x29   :  { %v1321_v36 = vld [vmem:[%s2648_s0 + $0xf] ss:$16 sm:%s401_s21]   ;;  %v399_v38 = vsel %vm123_vm1, %v1320_v34, %v394_v35  ;;  %1215 = vst.msk [vmem:[%s2649_s1 + $0x2] ss:$8 sm:$0xf] %vm3_vm3, %v1214_v37   ;;  %s538_s16 = smov 192 }
  0x2a   :  { %v1333_v39 = vld [vmem:[%s2648_s0 + $0x18f] ss:$16 sm:%s457_s24]   ;;  %1216 = vst.msk [vmem:[%s2649_s1 - $0x1d] ss:$8 sm:$0xf0] %vm3_vm3, %v1214_v37   ;;  %v404_v41 = vsel %vm128_vm2, %v1321_v36, %v399_v38  ;;  %s574_s14 = smov 12 }
  0x2b   :  { %v1334_v40 = vld [vmem:[%s2648_s0 + $0x18f] ss:$16 sm:%s460_s25]   ;;  %405 = vrot.lane.b32.xlu0 %v404_v41, %s1499_s6  ;;  %v1217_v47 = vld [vmem:[%s2648_s0 + $0x40] ss:$4 sm:$0xff]   ;;  %s1500_s25 = smov 64   ;;  %s579_s15 = smov 48 }
  0x2c   :  { %v463_v42 = vsel %vm118_vm0, %v1334_v40, %v1333_v39  ;;  %v1335_v43 = vld [vmem:[%s2648_s0 + $0x18f] ss:$16 sm:%s465_s3]   ;;  %s502_s3 = smov 3  ;;  %1218 = vst.msk [vmem:[%s2649_s1 + $0x4] ss:$8 sm:$0xf] %vm3_vm3, %v1217_v47  }
  0x2d   :  { %v1336_v44 = vld [vmem:[%s2648_s0 + $0x18f] ss:$16 sm:%s470_s4]   ;;  %v468_v45 = vsel %vm123_vm1, %v1335_v43, %v463_v42  ;;  %s505_s4 = smov 12  ;;  %1219 = vst.msk [vmem:[%s2649_s1 - $0x1b] ss:$8 sm:$0xf0] %vm3_vm3, %v1217_v47  }
  0x2e   :  { %v1328_v46 = vld [vmem:[%s2648_s0 + $0x10f] ss:$16 sm:%s434_s12]   ;;  %v473_v48 = vsel %vm128_vm2, %v1336_v44, %v468_v45  ;;  %s510_s12 = smov 48  ;;  %v1220_v53 = vld [vmem:[%s2648_s0 + $0x60] ss:$4 sm:$0xff]   ;;  %s584_s24 = smov 192 }
  0x2f   :  { %v1329_v49 = vld [vmem:[%s2648_s0 + $0x10f] ss:$16 sm:%s437_s19]   ;;  %474 = vrot.lane.b32.xlu1 %v473_v48, %s1499_s6  ;;  %1221 = vst.msk [vmem:[%s2649_s1 + $0x6] ss:$8 sm:$0xf] %vm3_vm3, %v1220_v53   ;;  %s556_s19 = smov 48 }
  0x30   :  { %v1330_v50 = vld [vmem:[%s2648_s0 + $0x10f] ss:$16 sm:%s442_s20]   ;;  %v440_v51 = vsel %vm118_vm0, %v1329_v49, %v1328_v46  ;;  %s480_s20 = smov 3  ;;  %v1342_v55 = vld [vmem:[%s2648_s0 + $0x82] ss:$16 sm:%s502_s3]   ;;  %s620_s22 = smov 12 }
  0x31   :  { %v1331_v52 = vld [vmem:[%s2648_s0 + $0x10f] ss:$16 sm:%s447_s29]   ;;  %v445_v54 = vsel %vm123_vm1, %v1330_v50, %v440_v51  ;;  %v1343_v56 = vld [vmem:[%s2648_s0 + $0x82] ss:$16 sm:%s505_s4]   ;;  %s607_s29 = smov 192  ;;  %s625_s23 = smov 48 }
  0x32   :  { %1222 = vst.msk [vmem:[%s2649_s1 - $0x19] ss:$8 sm:$0xf0] %vm3_vm3, %v1220_v53   ;;  %v450_v57 = vsel %vm128_vm2, %v1331_v52, %v445_v54  ;;  %v508_v58 = vsel %vm118_vm0, %v1343_v56, %v1342_v55  ;;  %v1344_v59 = vld [vmem:[%s2648_s0 + $0x82] ss:$16 sm:%s510_s12]   ;;  %s551_s12 = smov 12 }
  0x33   :  { %v1345_v60 = vld [vmem:[%s2648_s0 + $0x82] ss:$16 sm:%s515_s13]   ;;  %451 = vrot.lane.b32.xlu0 %v450_v57, %s1499_s6  ;;  %v513_v61 = vsel %vm123_vm1, %v1344_v59, %v508_v58  ;;  %v1247_v63 = vld [vmem:[%s2648_s0 + $0x180] ss:$4 sm:$0xff]   ;;  %s630_s4 = smov 192  ;;  %s666_s2 = smov 12 }
  0x34   :  { %v1338_v62 = vld [vmem:[%s2648_s0 + $0x2] ss:$16 sm:%s480_s20]   ;;  %v518_v0 = vsel %vm128_vm2, %v1345_v60, %v513_v61  ;;  %s561_s20 = smov 192  ;;  %1248 = vst.msk [vmem:[%s2649_s1 + $0x60] ss:$8 sm:$0xf] %vm3_vm3, %v1247_v63  }
  0x35   :  { %v1339_v1 = vld [vmem:[%s2648_s0 + $0x2] ss:$16 sm:%s483_s27]   ;;  %1249 = vst.msk [vmem:[%s2649_s1 + $0x41] ss:$8 sm:$0xf0] %vm3_vm3, %v1247_v63   ;;  %519 = vrot.lane.b32.xlu1 %v518_v0, %s1500_s25  ;;  %s671_s3 = smov 48 }
  0x36   :  { %v1340_v2 = vld [vmem:[%s2648_s0 + $0x2] ss:$16 sm:%s488_s28]   ;;  %v486_v3 = vsel %vm118_vm0, %v1339_v1, %v1338_v62  ;;  %s525_s28 = smov 3  ;;  %v1250_v5 = vld [vmem:[%s2648_s0 + $0x1a0] ss:$4 sm:$0xff]   ;;  %s740_s21 = smov 48 }
  0x37   :  { %v1341_v4 = vld [vmem:[%s2648_s0 + $0x2] ss:$16 sm:%s493_s9]   ;;  %v491_v6 = vsel %vm123_vm1, %v1340_v2, %v486_v3  ;;  %1251 = vst.msk [vmem:[%s2649_s1 + $0x62] ss:$8 sm:$0xf] %vm3_vm3, %v1250_v5   ;;  %s653_s9 = smov 192 }
  0x38   :  { %v1352_v7 = vld [vmem:[%s2648_s0 + $0x182] ss:$16 sm:%s548_s11]   ;;  %1252 = vst.msk [vmem:[%s2649_s1 + $0x43] ss:$8 sm:$0xf0] %vm3_vm3, %v1250_v5   ;;  %v496_v9 = vsel %vm128_vm2, %v1341_v4, %v491_v6  ;;  %s709_s26 = smov 3 }
  0x39   :  { %v1353_v8 = vld [vmem:[%s2648_s0 + $0x182] ss:$16 sm:%s551_s12]   ;;  %497 = vrot.lane.b32.xlu0 %v496_v9, %s1500_s25  ;;  %v1253_v15 = vld [vmem:[%s2648_s0 + $0x1c0] ss:$4 sm:$0xff]   ;;  %s676_s12 = smov 192  ;;  %s778_s11 = smov 3 }
  0x3a   :  { %v554_v10 = vsel %vm118_vm0, %v1353_v8, %v1352_v7  ;;  %v1354_v11 = vld [vmem:[%s2648_s0 + $0x182] ss:$16 sm:%s556_s19]   ;;  %s594_s19 = smov 3  ;;  %1254 = vst.msk [vmem:[%s2649_s1 + $0x64] ss:$8 sm:$0xf] %vm3_vm3, %v1253_v15  }
  0x3b   :  { %v1355_v12 = vld [vmem:[%s2648_s0 + $0x182] ss:$16 sm:%s561_s20]   ;;  %v559_v13 = vsel %vm123_vm1, %v1354_v11, %v554_v10  ;;  %s597_s20 = smov 12  ;;  %1255 = vst.msk [vmem:[%s2649_s1 + $0x45] ss:$8 sm:$0xf0] %vm3_vm3, %v1253_v15  }
  0x3c   :  { %v1347_v14 = vld [vmem:[%s2648_s0 + $0x102] ss:$16 sm:%s525_s28]   ;;  %v564_v16 = vsel %vm128_vm2, %v1355_v12, %v559_v13  ;;  %s602_s28 = smov 48  ;;  %v1256_v21 = vld [vmem:[%s2648_s0 + $0x1e0] ss:$4 sm:$0xff]   ;;  %s786_s17 = smov 48 }
  0x3d   :  { %v1348_v17 = vld [vmem:[%s2648_s0 + $0x102] ss:$16 sm:%s528_s7]   ;;  %565 = vrot.lane.b32.xlu1 %v564_v16, %s1500_s25  ;;  %1257 = vst.msk [vmem:[%s2649_s1 + $0x66] ss:$8 sm:$0xf] %vm3_vm3, %v1256_v21   ;;  %s791_s18 = smov 192 }
  0x3e   :  { %v1349_v18 = vld [vmem:[%s2648_s0 + $0x102] ss:$16 sm:%s533_s8]   ;;  %v531_v19 = vsel %vm118_vm0, %v1348_v17, %v1347_v14  ;;  %s571_s8 = smov 3  ;;  %v1362_v23 = vld [vmem:[%s2648_s0 + $0x86] ss:$16 sm:%s594_s19]   ;;  %s758_s27 = smov 12 }
  0x3f   :  { %v1350_v20 = vld [vmem:[%s2648_s0 + $0x102] ss:$16 sm:%s538_s16]   ;;  %v536_v22 = vsel %vm123_vm1, %v1349_v18, %v531_v19  ;;  %v1363_v24 = vld [vmem:[%s2648_s0 + $0x86] ss:$16 sm:%s597_s20]   ;;  %s699_s16 = smov 192  ;;  %s832_s13 = smov 48 }
  0x40   :  { %1258 = vst.msk [vmem:[%s2649_s1 + $0x47] ss:$8 sm:$0xf0] %vm3_vm3, %v1256_v21   ;;  %v541_v25 = vsel %vm128_vm2, %v1350_v20, %v536_v22  ;;  %v600_v26 = vsel %vm118_vm0, %v1363_v24, %v1362_v23  ;;  %v1364_v27 = vld [vmem:[%s2648_s0 + $0x86] ss:$16 sm:%s602_s28]   ;;  %s640_s28 = smov 3 }
  0x41   :  { %v1365_v28 = vld [vmem:[%s2648_s0 + $0x86] ss:$16 sm:%s607_s29]   ;;  %542 = vrot.lane.b32.xlu0 %v541_v25, %s1500_s25  ;;  %v605_v29 = vsel %vm123_vm1, %v1364_v27, %v600_v26  ;;  %s643_s29 = smov 12  ;;  %v1235_v31 = vld [vmem:[%s2648_s0 + $0x100] ss:$4 sm:$0xff]   ;;  %s877_s6 = smov 48 }
  0x42   :  { %v1357_v30 = vld [vmem:[%s2648_s0 + $0x6] ss:$16 sm:%s571_s8]   ;;  %v610_v32 = vsel %vm128_vm2, %v1365_v28, %v605_v29  ;;  %s648_s8 = smov 48  ;;  %1236 = vst.msk [vmem:[%s2649_s1 + $0x40] ss:$8 sm:$0xf] %vm3_vm3, %v1235_v31  }
  0x43   :  { %v1358_v33 = vld [vmem:[%s2648_s0 + $0x6] ss:$16 sm:%s574_s14]   ;;  %1237 = vst.msk [vmem:[%s2649_s1 + $0x21] ss:$8 sm:$0xf0] %vm3_vm3, %v1235_v31   ;;  %611 = vrot.lane.b32.xlu1 %v610_v32, %s1500_s25  ;;  %s837_s14 = smov 192 }
  0x44   :  { %v1359_v34 = vld [vmem:[%s2648_s0 + $0x6] ss:$16 sm:%s579_s15]   ;;  %v577_v35 = vsel %vm118_vm0, %v1358_v33, %v1357_v30  ;;  %s617_s15 = smov 3  ;;  %v1238_v37 = vld [vmem:[%s2648_s0 + $0x120] ss:$4 sm:$0xff]   ;;  %s882_s10 = smov 192 }
  0x45   :  { %v1360_v36 = vld [vmem:[%s2648_s0 + $0x6] ss:$16 sm:%s584_s24]   ;;  %v582_v38 = vsel %vm123_vm1, %v1359_v34, %v577_v35  ;;  %1239 = vst.msk [vmem:[%s2649_s1 + $0x42] ss:$8 sm:$0xf] %vm3_vm3, %v1238_v37   ;;  %s855_s19 = smov 48 }
  0x46   :  { %v1372_v39 = vld [vmem:[%s2648_s0 + $0x186] ss:$16 sm:%s640_s28]   ;;  %1240 = vst.msk [vmem:[%s2649_s1 + $0x23] ss:$8 sm:$0xf0] %vm3_vm3, %v1238_v37   ;;  %v587_v41 = vsel %vm128_vm2, %v1360_v36, %v582_v38  ;;  %s763_s28 = smov 48 }
  0x47   :  { %v1373_v40 = vld [vmem:[%s2648_s0 + $0x186] ss:$16 sm:%s643_s29]   ;;  %588 = vrot.lane.b32.xlu0 %v587_v41, %s1500_s25  ;;  %v1241_v47 = vld [vmem:[%s2648_s0 + $0x140] ss:$4 sm:$0xff]   ;;  %s814_s29 = smov 192  ;;  %s860_s24 = smov 192 }
  0x48   :  { %v646_v42 = vsel %vm118_vm0, %v1373_v40, %v1372_v39  ;;  %v1374_v43 = vld [vmem:[%s2648_s0 + $0x186] ss:$16 sm:%s648_s8]   ;;  %s686_s8 = smov 3  ;;  %1242 = vst.msk [vmem:[%s2649_s1 + $0x44] ss:$8 sm:$0xf] %vm3_vm3, %v1241_v47  }
  0x49   :  { %v1375_v44 = vld [vmem:[%s2648_s0 + $0x186] ss:$16 sm:%s653_s9]   ;;  %v651_v45 = vsel %vm123_vm1, %v1374_v43, %v646_v42  ;;  %s689_s9 = smov 12  ;;  %1243 = vst.msk [vmem:[%s2649_s1 + $0x25] ss:$8 sm:$0xf0] %vm3_vm3, %v1241_v47  }
  0x4a   :  { %v1367_v46 = vld [vmem:[%s2648_s0 + $0x106] ss:$16 sm:%s617_s15]   ;;  %v656_v48 = vsel %vm128_vm2, %v1375_v44, %v651_v45  ;;  %s694_s15 = smov 48  ;;  %v1244_v53 = vld [vmem:[%s2648_s0 + $0x160] ss:$4 sm:$0xff]   ;;  %s928_s5 = smov 192 }
  0x4b   :  { %v1368_v49 = vld [vmem:[%s2648_s0 + $0x106] ss:$16 sm:%s620_s22]   ;;  %657 = vrot.lane.b32.xlu1 %v656_v48, %s1500_s25  ;;  %1245 = vst.msk [vmem:[%s2649_s1 + $0x46] ss:$8 sm:$0xf] %vm3_vm3, %v1244_v53   ;;  %s745_s22 = smov 192 }
  0x4c   :  { %v1369_v50 = vld [vmem:[%s2648_s0 + $0x106] ss:$16 sm:%s625_s23]   ;;  %v623_v51 = vsel %vm118_vm0, %v1368_v49, %v1367_v46  ;;  %s663_s23 = smov 3  ;;  %v1382_v55 = vld [vmem:[%s2648_s0 + $0x8a] ss:$16 sm:%s686_s8]   ;;  %s824_s8 = smov 3 }
  0x4d   :  { %v1370_v52 = vld [vmem:[%s2648_s0 + $0x106] ss:$16 sm:%s630_s4]   ;;  %v628_v54 = vsel %vm123_vm1, %v1369_v50, %v623_v51  ;;  %v1383_v56 = vld [vmem:[%s2648_s0 + $0x8a] ss:$16 sm:%s689_s9]   ;;  %s722_s9 = smov 192  ;;  %s768_s4 = smov 192 }
  0x4e   :  { %1246 = vst.msk [vmem:[%s2649_s1 + $0x27] ss:$8 sm:$0xf0] %vm3_vm3, %v1244_v53   ;;  %v633_v57 = vsel %vm128_vm2, %v1370_v52, %v628_v54  ;;  %v692_v58 = vsel %vm118_vm0, %v1383_v56, %v1382_v55  ;;  %v1384_v59 = vld [vmem:[%s2648_s0 + $0x8a] ss:$16 sm:%s694_s15]   ;;  %s732_s15 = smov 3 }
  0x4f   :  { %v1385_v60 = vld [vmem:[%s2648_s0 + $0x8a] ss:$16 sm:%s699_s16]   ;;  %634 = vrot.lane.b32.xlu0 %v633_v57, %s1500_s25  ;;  %v697_v61 = vsel %vm123_vm1, %v1384_v59, %v692_v58  ;;  %s735_s16 = smov 12  ;;  %s1501_s7 = smov 32  }
  0x50   :  { %v1377_v62 = vld [vmem:[%s2648_s0 + $0xa] ss:$16 sm:%s663_s23]   ;;  %v702_v63 = vsel %vm128_vm2, %v1385_v60, %v697_v61  ;;  %v1402_v19 = vld [vmem:[%s2648_s0 + $0x8e] ss:$16 sm:%s778_s11]   ;;  %s809_s23 = smov 48  ;;  %s905_s20 = smov 192 }
  0x51   :  { %v1378_v0 = vld [vmem:[%s2648_s0 + $0xa] ss:$16 sm:%s666_s2]   ;;  %703 = vrot.lane.b32.xlu1 %v702_v63, %s1500_s25  ;;  %s712_s2 = smov 12  ;;  %s974_s30 = smov 192 }
  0x52   :  { %v1379_v1 = vld [vmem:[%s2648_s0 + $0xa] ss:$16 sm:%s671_s3]   ;;  %v669_v2 = vsel %vm118_vm0, %v1378_v0, %v1377_v62  ;;  %s717_s3 = smov 48  ;;  %v1404_v23 = vld [vmem:[%s2648_s0 + $0x8e] ss:$16 sm:%s786_s17]   ;;  %s801_s17 = smov 3 }
  0x53   :  { %v1380_v3 = vld [vmem:[%s2648_s0 + $0xa] ss:$16 sm:%s676_s12]   ;;  %v674_v4 = vsel %vm123_vm1, %v1379_v1, %v669_v2  ;;  %s781_s12 = smov 12  ;;  %v1405_v24 = vld [vmem:[%s2648_s0 + $0x8e] ss:$16 sm:%s791_s18]   ;;  %s850_s18 = smov 12 }
  0x54   :  { %v1392_v5 = vld [vmem:[%s2648_s0 + $0x18a] ss:$16 sm:%s732_s15]   ;;  %v679_v7 = vsel %vm128_vm2, %v1380_v3, %v674_v4  ;;  %v1403_v20 = vld [vmem:[%s2648_s0 + $0x8e] ss:$16 sm:%s781_s12]   ;;  %s900_s15 = smov 48  ;;  %s946_s11 = smov 48 }
  0x55   :  { %v1393_v6 = vld [vmem:[%s2648_s0 + $0x18a] ss:$16 sm:%s735_s16]   ;;  %680 = vrot.lane.b32.xlu0 %v679_v7, %s1500_s25  ;;  %v784_v22 = vsel %vm118_vm0, %v1403_v20, %v1402_v19  ;;  %s951_s16 = smov 192  ;;  %s997_s12 = smov 192 }
  0x56   :  { %v738_v8 = vsel %vm118_vm0, %v1393_v6, %v1392_v5  ;;  %v1394_v9 = vld [vmem:[%s2648_s0 + $0x18a] ss:$16 sm:%s740_s21]   ;;  %s755_s21 = smov 3  ;;  %v789_v25 = vsel %vm123_vm1, %v1404_v23, %v784_v22  ;;  %v1398_v28 = vld [vmem:[%s2648_s0 + $0xe] ss:$16 sm:%s758_s27]   ;;  %s915_s27 = smov 3 }
  0x57   :  { %v1395_v10 = vld [vmem:[%s2648_s0 + $0x18a] ss:$16 sm:%s745_s22]   ;;  %v743_v11 = vsel %vm123_vm1, %v1394_v9, %v738_v8  ;;  %v1397_v26 = vld [vmem:[%s2648_s0 + $0xe] ss:$16 sm:%s755_s21]   ;;  %v794_v27 = vsel %vm128_vm2, %v1405_v24, %v789_v25  ;;  %s804_s22 = smov 12  ;;  %s1061_s21 = smov 48 }
  0x58   :  { %v1387_v12 = vld [vmem:[%s2648_s0 + $0x10a] ss:$16 sm:%s709_s26]   ;;  %v748_v13 = vsel %vm128_vm2, %v1395_v10, %v743_v11  ;;  %v1399_v29 = vld [vmem:[%s2648_s0 + $0xe] ss:$16 sm:%s763_s28]   ;;  %v761_v30 = vsel %vm118_vm0, %v1398_v28, %v1397_v26  ;;  %s918_s28 = smov 12  ;;  %s1020_s26 = smov 192 }
  0x59   :  { %v1388_v14 = vld [vmem:[%s2648_s0 + $0x10a] ss:$16 sm:%s712_s2]   ;;  %749 = vrot.lane.b32.xlu1 %v748_v13, %s1500_s25  ;;  %v766_v32 = vsel %vm123_vm1, %v1399_v29, %v761_v30  ;;  %s1038_s2 = smov 48 }
  0x5a   :  { %v1389_v15 = vld [vmem:[%s2648_s0 + $0x10a] ss:$16 sm:%s717_s3]   ;;  %v715_v16 = vsel %vm118_vm0, %v1388_v14, %v1387_v12  ;;  %v1400_v31 = vld [vmem:[%s2648_s0 + $0xe] ss:$16 sm:%s768_s4]   ;;  %s869_s3 = smov 3  ;;  %s872_s4 = smov 12 }
  0x5b   :  { %v1390_v17 = vld [vmem:[%s2648_s0 + $0x10a] ss:$16 sm:%s722_s9]   ;;  %v720_v18 = vsel %vm123_vm1, %v1389_v15, %v715_v16  ;;  %s827_s9 = smov 12  ;;  %v1412_v33 = vld [vmem:[%s2648_s0 + $0x18e] ss:$16 sm:%s824_s8]   ;;  %v771_v35 = vsel %vm128_vm2, %v1400_v31, %v766_v32  ;;  %s992_s8 = smov 48 }
  0x5c   :  { %v725_v21 = vsel %vm128_vm2, %v1390_v17, %v720_v18  ;;  %v1413_v34 = vld [vmem:[%s2648_s0 + $0x18e] ss:$16 sm:%s827_s9]   ;;  %v1421_v47 = vld [vmem:[%s2648_s0 + $0x81] ss:$16 sm:%s869_s3]   ;;  %s1043_s9 = smov 192  ;;  %s1089_s3 = smov 192 }
  0x5d   :  { %726 = vrot.lane.b32.xlu0 %v725_v21, %s1500_s25  ;;  %795 = vrot.lane.b32.xlu1 %v794_v27, %s1500_s25  ;;  %v830_v36 = vsel %vm118_vm0, %v1413_v34, %v1412_v33  ;;  %v1414_v37 = vld [vmem:[%s2648_s0 + $0x18e] ss:$16 sm:%s832_s13]   ;;  %s847_s13 = smov 3 }
  0x5e   :  { %v1415_v38 = vld [vmem:[%s2648_s0 + $0x18e] ss:$16 sm:%s837_s14]   ;;  %v835_v39 = vsel %vm123_vm1, %v1414_v37, %v830_v36  ;;  %v1422_v48 = vld [vmem:[%s2648_s0 + $0x81] ss:$16 sm:%s872_s4]   ;;  %s923_s4 = smov 48  ;;  %s895_s14 = smov 12 }
  0x5f   :  { %v1407_v40 = vld [vmem:[%s2648_s0 + $0x10e] ss:$16 sm:%s801_s17]   ;;  %v840_v41 = vsel %vm128_vm2, %v1415_v38, %v835_v39  ;;  %v875_v50 = vsel %vm118_vm0, %v1422_v48, %v1421_v47  ;;  %v1423_v51 = vld [vmem:[%s2648_s0 + $0x81] ss:$16 sm:%s877_s6]   ;;  %s892_s6 = smov 3  ;;  %s1107_s17 = smov 48 }
  0x60   :  { %v1408_v42 = vld [vmem:[%s2648_s0 + $0x10e] ss:$16 sm:%s804_s22]   ;;  %v1424_v52 = vld [vmem:[%s2648_s0 + $0x81] ss:$16 sm:%s882_s10]   ;;  %v880_v53 = vsel %vm123_vm1, %v1423_v51, %v875_v50  ;;  %s941_s10 = smov 12  ;;  %s1066_s22 = smov 192 }
  0x61   :  { %772 = vrot.lane.b32.xlu0 %v771_v35, %s1500_s25  ;;  %v1409_v43 = vld [vmem:[%s2648_s0 + $0x10e] ss:$16 sm:%s809_s23]   ;;  %841 = vrot.lane.b32.xlu1 %v840_v41, %s1500_s25  ;;  %v807_v44 = vsel %vm118_vm0, %v1408_v42, %v1407_v40  ;;  %v885_v55 = vsel %vm128_vm2, %v1424_v52, %v880_v53  ;;  %s961_s23 = smov 3 }
  0x62   :  { %v1410_v45 = vld [vmem:[%s2648_s0 + $0x10e] ss:$16 sm:%s814_s29]   ;;  %v812_v46 = vsel %vm123_vm1, %v1409_v43, %v807_v44  ;;  %v1417_v54 = vld [vmem:[%s2648_s0 + $0x1] ss:$16 sm:%s847_s13]   ;;  %s969_s29 = smov 48  ;;  %s1153_s13 = smov 48 }
  0x63   :  { %v817_v49 = vsel %vm128_vm2, %v1410_v45, %v812_v46  ;;  %v1418_v56 = vld [vmem:[%s2648_s0 + $0x1] ss:$16 sm:%s850_s18]   ;;  %v1441_v11 = vld [vmem:[%s2648_s0 + $0x85] ss:$16 sm:%s961_s23]   ;;  %s1112_s18 = smov 192  ;;  %s1130_s23 = smov 48 }
  0x64   :  { %v1419_v57 = vld [vmem:[%s2648_s0 + $0x1] ss:$16 sm:%s855_s19]   ;;  %v853_v58 = vsel %vm118_vm0, %v1418_v56, %v1417_v54  ;;  %v1443_v15 = vld [vmem:[%s2648_s0 + $0x85] ss:$16 sm:%s969_s29]   ;;  %s1007_s19 = smov 3  ;;  %s984_s29 = smov 3 }
  0x65   :  { %818 = vrot.lane.b32.xlu0 %v817_v49, %s1500_s25  ;;  %886 = vrot.lane.b32.xlu1 %v885_v55, %s1501_s7  ;;  %v1420_v59 = vld [vmem:[%s2648_s0 + $0x1] ss:$16 sm:%s860_s24]   ;;  %v858_v60 = vsel %vm123_vm1, %v1419_v57, %v853_v58  ;;  %s964_s24 = smov 12  ;;  %s1015_s25 = smov 48 }
  0x66   :  { %v1431_v61 = vld [vmem:[%s2648_s0 + $0x181] ss:$16 sm:%s915_s27]   ;;  %v863_v63 = vsel %vm128_vm2, %v1420_v59, %v858_v60  ;;  %v1442_v12 = vld [vmem:[%s2648_s0 + $0x85] ss:$16 sm:%s964_s24]   ;;  %s1084_s27 = smov 48  ;;  %s1181_s24 = smov 192 }
  0x67   :  { %v1432_v62 = vld [vmem:[%s2648_s0 + $0x181] ss:$16 sm:%s918_s28]   ;;  %v967_v14 = vsel %vm118_vm0, %v1442_v12, %v1441_v11  ;;  %v1444_v16 = vld [vmem:[%s2648_s0 + $0x85] ss:$16 sm:%s974_s30]   ;;  %s1033_s30 = smov 12  ;;  %s1135_s28 = smov 192 }
  0x68   :  { %v921_v0 = vsel %vm118_vm0, %v1432_v62, %v1431_v61  ;;  %v1433_v1 = vld [vmem:[%s2648_s0 + $0x181] ss:$16 sm:%s923_s4]   ;;  %s938_s4 = smov 3  ;;  %v972_v17 = vsel %vm123_vm1, %v1443_v15, %v967_v14  ;;  %v1437_v20 = vld [vmem:[%s2648_s0 + $0x5] ss:$16 sm:%s941_s10]   ;;  %s1204_s10 = smov 192 }
  0x69   :  { %v1434_v2 = vld [vmem:[%s2648_s0 + $0x181] ss:$16 sm:%s928_s5]   ;;  %864 = vrot.lane.b32.xlu0 %v863_v63, %s1501_s7  ;;  %v926_v3 = vsel %vm123_vm1, %v1433_v1, %v921_v0  ;;  %v977_v19 = vsel %vm128_vm2, %v1444_v16, %v972_v17  ;;  %s987_s5 = smov 12 }
  0x6a   :  { %v1426_v4 = vld [vmem:[%s2648_s0 + $0x101] ss:$16 sm:%s892_s6]   ;;  %v931_v5 = vsel %vm128_vm2, %v1434_v2, %v926_v3  ;;  %v1436_v18 = vld [vmem:[%s2648_s0 + $0x5] ss:$16 sm:%s938_s4]   ;;  %s1199_s6 = smov 48 }
  0x6b   :  { %v1427_v6 = vld [vmem:[%s2648_s0 + $0x101] ss:$16 sm:%s895_s14]   ;;  %932 = vrot.lane.b32.xlu1 %v931_v5, %s1501_s7  ;;  %v944_v22 = vsel %vm118_vm0, %v1437_v20, %v1436_v18  ;;  %s1158_s14 = smov 192 }
  0x6c   :  { %v1428_v7 = vld [vmem:[%s2648_s0 + $0x101] ss:$16 sm:%s900_s15]   ;;  %v898_v8 = vsel %vm118_vm0, %v1427_v6, %v1426_v4  ;;  %v1438_v21 = vld [vmem:[%s2648_s0 + $0x5] ss:$16 sm:%s946_s11]   ;;  %s1053_s15 = smov 3  ;;  %s1099_s11 = smov 3 }
  0x6d   :  { %v1429_v9 = vld [vmem:[%s2648_s0 + $0x101] ss:$16 sm:%s905_s20]   ;;  %v903_v10 = vsel %vm123_vm1, %v1428_v7, %v898_v8  ;;  %s1010_s20 = smov 12  ;;  %v1439_v23 = vld [vmem:[%s2648_s0 + $0x5] ss:$16 sm:%s951_s16]   ;;  %v949_v24 = vsel %vm123_vm1, %v1438_v21, %v944_v22  ;;  %s1056_s16 = smov 12 }
  0x6e   :  { %v908_v13 = vsel %vm128_vm2, %v1429_v9, %v903_v10  ;;  %v1451_v25 = vld [vmem:[%s2648_s0 + $0x185] ss:$16 sm:%s1007_s19]   ;;  %v954_v27 = vsel %vm128_vm2, %v1439_v23, %v949_v24  ;;  %v1461_v39 = vld [vmem:[%s2648_s0 + $0x89] ss:$16 sm:%s1053_s15]   ;;  %s1176_s19 = smov 48 }
  0x6f   :  { %909 = vrot.lane.b32.xlu0 %v908_v13, %s1501_s7  ;;  %978 = vrot.lane.b32.xlu1 %v977_v19, %s1501_s7  ;;  %v1452_v26 = vld [vmem:[%s2648_s0 + $0x185] ss:$16 sm:%s1010_s20]  }
  0x70   :  { %v1013_v28 = vsel %vm118_vm0, %v1452_v26, %v1451_v25  ;;  %v1453_v29 = vld [vmem:[%s2648_s0 + $0x185] ss:$16 sm:%s1015_s25]   ;;  %s1030_s25 = smov 3  ;;  %v1462_v40 = vld [vmem:[%s2648_s0 + $0x89] ss:$16 sm:%s1056_s16]  }
  0x71   :  { %v1454_v30 = vld [vmem:[%s2648_s0 + $0x185] ss:$16 sm:%s1020_s26]   ;;  %v1018_v31 = vsel %vm123_vm1, %v1453_v29, %v1013_v28  ;;  %v1059_v42 = vsel %vm118_vm0, %v1462_v40, %v1461_v39  ;;  %v1463_v43 = vld [vmem:[%s2648_s0 + $0x89] ss:$16 sm:%s1061_s21]   ;;  %s1076_s21 = smov 3  ;;  %s1079_s26 = smov 12 }
  0x72   :  { %v1446_v32 = vld [vmem:[%s2648_s0 + $0x105] ss:$16 sm:%s984_s29]   ;;  %v1023_v33 = vsel %vm128_vm2, %v1454_v30, %v1018_v31  ;;  %v1464_v44 = vld [vmem:[%s2648_s0 + $0x89] ss:$16 sm:%s1066_s22]   ;;  %v1064_v45 = vsel %vm123_vm1, %v1463_v43, %v1059_v42  ;;  %s1125_s22 = smov 12 }
  0x73   :  { %955 = vrot.lane.b32.xlu0 %v954_v27, %s1501_s7  ;;  %v1447_v34 = vld [vmem:[%s2648_s0 + $0x105] ss:$16 sm:%s987_s5]   ;;  %1024 = vrot.lane.b32.xlu1 %v1023_v33, %s1501_s7  ;;  %v1069_v47 = vsel %vm128_vm2, %v1464_v44, %v1064_v45 }
  0x74   :  { %v1448_v35 = vld [vmem:[%s2648_s0 + $0x105] ss:$16 sm:%s992_s8]   ;;  %v990_v36 = vsel %vm118_vm0, %v1447_v34, %v1446_v32  ;;  %v1456_v46 = vld [vmem:[%s2648_s0 + $0x9] ss:$16 sm:%s1030_s25]   ;;  %s1145_s8 = smov 3 }
  0x75   :  { %v1449_v37 = vld [vmem:[%s2648_s0 + $0x105] ss:$16 sm:%s997_s12]   ;;  %v995_v38 = vsel %vm123_vm1, %v1448_v35, %v990_v36  ;;  %s1102_s12 = smov 12  ;;  %v1457_v48 = vld [vmem:[%s2648_s0 + $0x9] ss:$16 sm:%s1033_s30]  }
  0x76   :  { %v1000_v41 = vsel %vm128_vm2, %v1449_v37, %v995_v38  ;;  %v1458_v49 = vld [vmem:[%s2648_s0 + $0x9] ss:$16 sm:%s1038_s2]   ;;  %v1036_v50 = vsel %vm118_vm0, %v1457_v48, %v1456_v46  ;;  %v1481_v3 = vld [vmem:[%s2648_s0 + $0x8d] ss:$16 sm:%s1145_s8]   ;;  %s1191_s2 = smov 3 }
  0x77   :  { %1001 = vrot.lane.b32.xlu0 %v1000_v41, %s1501_s7  ;;  %1070 = vrot.lane.b32.xlu1 %v1069_v47, %s1501_s7  ;;  %v1459_v51 = vld [vmem:[%s2648_s0 + $0x9] ss:$16 sm:%s1043_s9]   ;;  %v1041_v52 = vsel %vm123_vm1, %v1458_v49, %v1036_v50  ;;  %s1148_s9 = smov 12 }
  0x78   :  { %v1471_v53 = vld [vmem:[%s2648_s0 + $0x189] ss:$16 sm:%s1099_s11]   ;;  %v1046_v55 = vsel %vm128_vm2, %v1459_v51, %v1041_v52  ;;  %v1482_v4 = vld [vmem:[%s2648_s0 + $0x8d] ss:$16 sm:%s1148_s9]   ;;  %v176_v30 = vpop.permute.xlu1 %175  }
  0x79   :  { %v1472_v54 = vld [vmem:[%s2648_s0 + $0x189] ss:$16 sm:%s1102_s12]   ;;  %v1151_v6 = vsel %vm118_vm0, %v1482_v4, %v1481_v3  ;;  %v1483_v7 = vld [vmem:[%s2648_s0 + $0x8d] ss:$16 sm:%s1153_s13]   ;;  %s1168_s13 = smov 3 }
  0x7a   :  { %v1105_v56 = vsel %vm118_vm0, %v1472_v54, %v1471_v53  ;;  %v1473_v57 = vld [vmem:[%s2648_s0 + $0x189] ss:$16 sm:%s1107_s17]   ;;  %s1122_s17 = smov 3  ;;  %v1484_v8 = vld [vmem:[%s2648_s0 + $0x8d] ss:$16 sm:%s1158_s14]   ;;  %v1156_v9 = vsel %vm123_vm1, %v1483_v7, %v1151_v6 }
  0x7b   :  { %v1474_v58 = vld [vmem:[%s2648_s0 + $0x189] ss:$16 sm:%s1112_s18]   ;;  %1047 = vrot.lane.b32.xlu0 %v1046_v55, %s1501_s7  ;;  %v1110_v59 = vsel %vm123_vm1, %v1473_v57, %v1105_v56  ;;  %v1161_v11 = vsel %vm128_vm2, %v1484_v8, %v1156_v9  ;;  %s1171_s18 = smov 12  ;;  %1272 = vst.msk [vmem:[%s2649_s1 + $0x40] sm:$0xff] %vm132_vm4, %v176_v30  }
  0x7c   :  { %v1466_v60 = vld [vmem:[%s2648_s0 + $0x109] ss:$16 sm:%s1076_s21]   ;;  %v1115_v61 = vsel %vm128_vm2, %v1474_v58, %v1110_v59  ;;  %v1476_v10 = vld [vmem:[%s2648_s0 + $0xd] ss:$16 sm:%s1122_s17]   ;;  %v131_v33 = vpop.permute.xlu0 %130  }
  0x7d   :  { %v1467_v62 = vld [vmem:[%s2648_s0 + $0x109] ss:$16 sm:%s1079_s26]   ;;  %1116 = vrot.lane.b32.xlu1 %v1115_v61, %s1501_s7  ;;  %133 = vst.msk [vmem:[%s2649_s1] sm:$0xff] %vm132_vm4, %v131_v33  }
  0x7e   :  { %v1468_v63 = vld [vmem:[%s2648_s0 + $0x109] ss:$16 sm:%s1084_s27]   ;;  %v1082_v0 = vsel %vm118_vm0, %v1467_v62, %v1466_v60  ;;  %v1477_v12 = vld [vmem:[%s2648_s0 + $0xd] ss:$16 sm:%s1125_s22]  }
  0x7f   :  { %v1469_v1 = vld [vmem:[%s2648_s0 + $0x109] ss:$16 sm:%s1089_s3]   ;;  %v1087_v2 = vsel %vm123_vm1, %v1468_v63, %v1082_v0  ;;  %s1194_s3 = smov 12  ;;  %v1478_v13 = vld [vmem:[%s2648_s0 + $0xd] ss:$16 sm:%s1130_s23]   ;;  %v1128_v14 = vsel %vm118_vm0, %v1477_v12, %v1476_v10 }
  0x80   :  { %v1092_v5 = vsel %vm128_vm2, %v1469_v1, %v1087_v2  ;;  %v1479_v15 = vld [vmem:[%s2648_s0 + $0xd] ss:$16 sm:%s1135_s28]   ;;  %v1133_v16 = vsel %vm123_vm1, %v1478_v13, %v1128_v14  ;;  %v199_v34 = vpop.permute.xlu1 %198  }
  0x81   :  { %1093 = vrot.lane.b32.xlu0 %v1092_v5, %s1501_s7  ;;  %1162 = vrot.lane.b32.xlu1 %v1161_v11, %s1501_s7  ;;  %v1491_v17 = vld [vmem:[%s2648_s0 + $0x18d] ss:$16 sm:%s1191_s2]   ;;  %v1138_v19 = vsel %vm128_vm2, %v1479_v15, %v1133_v16 }
  0x82   :  { %v1492_v18 = vld [vmem:[%s2648_s0 + $0x18d] ss:$16 sm:%s1194_s3]   ;;  %1277 = vst.msk [vmem:[%s2649_s1 + $0x60] sm:$0xff] %vm132_vm4, %v199_v34  }
  0x83   :  { %v1197_v20 = vsel %vm118_vm0, %v1492_v18, %v1491_v17  ;;  %v1493_v21 = vld [vmem:[%s2648_s0 + $0x18d] ss:$16 sm:%s1199_s6]  }
  0x84   :  { %v1494_v22 = vld [vmem:[%s2648_s0 + $0x18d] ss:$16 sm:%s1204_s10]   ;;  %v1202_v23 = vsel %vm123_vm1, %v1493_v21, %v1197_v20  ;;  %v153_v35 = vpop.permute.xlu0 %152   ;;  %v245_v36 = vpop.permute.xlu1 %244  }
  0x85   :  { %1139 = vrot.lane.b32.xlu0 %v1138_v19, %s1501_s7  ;;  %v1486_v24 = vld [vmem:[%s2648_s0 + $0x10d] ss:$16 sm:%s1168_s13]   ;;  %v1207_v25 = vsel %vm128_vm2, %v1494_v22, %v1202_v23  ;;  %1267 = vst.msk [vmem:[%s2649_s1 + $0x20] sm:$0xff] %vm132_vm4, %v153_v35  }
  0x86   :  { %v1487_v26 = vld [vmem:[%s2648_s0 + $0x10d] ss:$16 sm:%s1171_s18]   ;;  %1208 = vrot.lane.b32.xlu1 %v1207_v25, %s1501_s7  ;;  %1287 = vst.msk [vmem:[%s2649_s1 + $0x28] sm:$0xff] %vm132_vm4, %v245_v36  }
  0x87   :  { %v1488_v27 = vld [vmem:[%s2648_s0 + $0x10d] ss:$16 sm:%s1176_s19]   ;;  %v1174_v28 = vsel %vm118_vm0, %v1487_v26, %v1486_v24 }
  0x88   :  { %v1489_v29 = vld [vmem:[%s2648_s0 + $0x10d] ss:$16 sm:%s1181_s24]   ;;  %v1179_v31 = vsel %vm123_vm1, %v1488_v27, %v1174_v28  ;;  %v222_v37 = vpop.permute.xlu0 %221  }
  0x89   :  { %v1184_v32 = vsel %vm128_vm2, %v1489_v29, %v1179_v31  ;;  %1282 = vst.msk [vmem:[%s2649_s1 + $0x8] sm:$0xff] %vm132_vm4, %v222_v37  }
  0x8a   :  { %1185 = vrot.lane.b32.xlu0 %v1184_v32, %s1501_s7  ;;  %v291_v38 = vpop.permute.xlu1 %290  }
  0x8b   :  { %1297 = vst.msk [vmem:[%s2649_s1 + $0x68] sm:$0xff] %vm132_vm4, %v291_v38  }
  0x8e   :  { %v268_v39 = vpop.permute.xlu0 %267   ;;  %v337_v40 = vpop.permute.xlu1 %336  }
  0x8f   :  { %1292 = vst.msk [vmem:[%s2649_s1 + $0x48] sm:$0xff] %vm132_vm4, %v268_v39   ;;  %1307 = vst.msk [vmem:[%s2649_s1 + $0x30] sm:$0xff] %vm132_vm4, %v337_v40  }
  0x92   :  { %v314_v41 = vpop.permute.xlu0 %313  }
  0x93   :  { %1302 = vst.msk [vmem:[%s2649_s1 + $0x10] sm:$0xff] %vm132_vm4, %v314_v41  }
  0x95   :  { %v383_v42 = vpop.permute.xlu1 %382  }
  0x96   :  { %1317 = vst.msk [vmem:[%s2649_s1 + $0x70] sm:$0xff] %vm132_vm4, %v383_v42  }
  0x99   :  { %v360_v43 = vpop.permute.xlu0 %359   ;;  %v429_v44 = vpop.permute.xlu1 %428  }
  0x9a   :  { %1312 = vst.msk [vmem:[%s2649_s1 + $0x50] sm:$0xff] %vm132_vm4, %v360_v43   ;;  %1327 = vst.msk [vmem:[%s2649_s1 + $0x38] sm:$0xff] %vm132_vm4, %v429_v44  }
  0x9d   :  { %v406_v45 = vpop.permute.xlu0 %405  }
  0x9e   :  { %1322 = vst.msk [vmem:[%s2649_s1 + $0x18] sm:$0xff] %vm132_vm4, %v406_v45  }
  0xa1   :  { %v475_v46 = vpop.permute.xlu1 %474  }
  0xa2   :  { %1337 = vst.msk [vmem:[%s2649_s1 + $0x78] sm:$0xff] %vm132_vm4, %v475_v46  }
  0xa5   :  { %v452_v47 = vpop.permute.xlu0 %451  }
  0xa6   :  { %1332 = vst.msk [vmem:[%s2649_s1 + $0x58] sm:$0xff] %vm132_vm4, %v452_v47  }
  0xa7   :  { %v520_v48 = vpop.permute.xlu1 %519  }
  0xa8   :  { %1346 = vst.msk [vmem:[%s2649_s1 + $0x20] sm:$0xff] %vm499_vm5, %v520_v48  }
  0xab   :  { %v498_v49 = vpop.permute.xlu0 %497  }
  0xac   :  { %500 = vst.msk [vmem:[%s2649_s1] sm:$0xff] %vm499_vm5, %v498_v49  }
  0xaf   :  { %v566_v50 = vpop.permute.xlu1 %565  }
  0xb0   :  { %1356 = vst.msk [vmem:[%s2649_s1 + $0x60] sm:$0xff] %vm499_vm5, %v566_v50  }
  0xb3   :  { %v543_v51 = vpop.permute.xlu0 %542  }
  0xb4   :  { %1351 = vst.msk [vmem:[%s2649_s1 + $0x40] sm:$0xff] %vm499_vm5, %v543_v51  }
  0xb5   :  { %v612_v52 = vpop.permute.xlu1 %611  }
  0xb6   :  { %1366 = vst.msk [vmem:[%s2649_s1 + $0x28] sm:$0xff] %vm499_vm5, %v612_v52  }
  0xb9   :  { %v589_v53 = vpop.permute.xlu0 %588  }
  0xba   :  { %1361 = vst.msk [vmem:[%s2649_s1 + $0x8] sm:$0xff] %vm499_vm5, %v589_v53  }
  0xbd   :  { %v658_v54 = vpop.permute.xlu1 %657  }
  0xbe   :  { %1376 = vst.msk [vmem:[%s2649_s1 + $0x68] sm:$0xff] %vm499_vm5, %v658_v54  }
  0xc1   :  { %v635_v55 = vpop.permute.xlu0 %634  }
  0xc2   :  { %1371 = vst.msk [vmem:[%s2649_s1 + $0x48] sm:$0xff] %vm499_vm5, %v635_v55  }
  0xc3   :  { %v704_v56 = vpop.permute.xlu1 %703  }
  0xc4   :  { %1386 = vst.msk [vmem:[%s2649_s1 + $0x30] sm:$0xff] %vm499_vm5, %v704_v56  }
  0xc7   :  { %v681_v57 = vpop.permute.xlu0 %680  }
  0xc8   :  { %1381 = vst.msk [vmem:[%s2649_s1 + $0x10] sm:$0xff] %vm499_vm5, %v681_v57  }
  0xcb   :  { %v750_v58 = vpop.permute.xlu1 %749  }
  0xcc   :  { %1396 = vst.msk [vmem:[%s2649_s1 + $0x70] sm:$0xff] %vm499_vm5, %v750_v58  }
  0xcf   :  { %v727_v59 = vpop.permute.xlu0 %726   ;;  %v796_v60 = vpop.permute.xlu1 %795  }
  0xd0   :  { %1391 = vst.msk [vmem:[%s2649_s1 + $0x50] sm:$0xff] %vm499_vm5, %v727_v59   ;;  %1406 = vst.msk [vmem:[%s2649_s1 + $0x38] sm:$0xff] %vm499_vm5, %v796_v60  }
  0xd3   :  { %v773_v61 = vpop.permute.xlu0 %772   ;;  %v842_v62 = vpop.permute.xlu1 %841  }
  0xd4   :  { %1401 = vst.msk [vmem:[%s2649_s1 + $0x18] sm:$0xff] %vm499_vm5, %v773_v61   ;;  %1416 = vst.msk [vmem:[%s2649_s1 + $0x78] sm:$0xff] %vm499_vm5, %v842_v62  }
  0xd7   :  { %v819_v63 = vpop.permute.xlu0 %818   ;;  %v887_v0 = vpop.permute.xlu1 %886  }
  0xd8   :  { %1411 = vst.msk [vmem:[%s2649_s1 + $0x58] sm:$0xff] %vm499_vm5, %v819_v63  }
  0xd9   :  { %1425 = vst.msk [vmem:[%s2649_s1 + $0x20] sm:$0xff] %vm866_vm6, %v887_v0  }
  0xdb   :  { %v865_v1 = vpop.permute.xlu0 %864  }
  0xdc   :  { %867 = vst.msk [vmem:[%s2649_s1] sm:$0xff] %vm866_vm6, %v865_v1  }
  0xdd   :  { %v933_v2 = vpop.permute.xlu1 %932  }
  0xde   :  { %1435 = vst.msk [vmem:[%s2649_s1 + $0x60] sm:$0xff] %vm866_vm6, %v933_v2  }
  0xe1   :  { %v910_v3 = vpop.permute.xlu0 %909   ;;  %v979_v4 = vpop.permute.xlu1 %978  }
  0xe2   :  { %1430 = vst.msk [vmem:[%s2649_s1 + $0x40] sm:$0xff] %vm866_vm6, %v910_v3   ;;  %1445 = vst.msk [vmem:[%s2649_s1 + $0x28] sm:$0xff] %vm866_vm6, %v979_v4  }
  0xe5   :  { %v956_v5 = vpop.permute.xlu0 %955   ;;  %v1025_v6 = vpop.permute.xlu1 %1024  }
  0xe6   :  { %1440 = vst.msk [vmem:[%s2649_s1 + $0x8] sm:$0xff] %vm866_vm6, %v956_v5   ;;  %1455 = vst.msk [vmem:[%s2649_s1 + $0x68] sm:$0xff] %vm866_vm6, %v1025_v6  }
  0xe9   :  { %v1002_v7 = vpop.permute.xlu0 %1001   ;;  %v1071_v8 = vpop.permute.xlu1 %1070  }
  0xea   :  { %1450 = vst.msk [vmem:[%s2649_s1 + $0x48] sm:$0xff] %vm866_vm6, %v1002_v7   ;;  %1465 = vst.msk [vmem:[%s2649_s1 + $0x30] sm:$0xff] %vm866_vm6, %v1071_v8  }
  0xed   :  { %v1048_v9 = vpop.permute.xlu0 %1047  }
  0xee   :  { %1460 = vst.msk [vmem:[%s2649_s1 + $0x10] sm:$0xff] %vm866_vm6, %v1048_v9  }
  0xef   :  { %v1117_v10 = vpop.permute.xlu1 %1116  }
  0xf0   :  { %1475 = vst.msk [vmem:[%s2649_s1 + $0x70] sm:$0xff] %vm866_vm6, %v1117_v10  }
  0xf3   :  { %v1094_v11 = vpop.permute.xlu0 %1093   ;;  %v1163_v12 = vpop.permute.xlu1 %1162  }
  0xf4   :  { %1470 = vst.msk [vmem:[%s2649_s1 + $0x50] sm:$0xff] %vm866_vm6, %v1094_v11   ;;  %1485 = vst.msk [vmem:[%s2649_s1 + $0x38] sm:$0xff] %vm866_vm6, %v1163_v12  }
  0xf7   :  { %v1140_v13 = vpop.permute.xlu0 %1139  }
  0xf8   :  { %1480 = vst.msk [vmem:[%s2649_s1 + $0x18] sm:$0xff] %vm866_vm6, %v1140_v13   ;;  %v1209_v14 = vpop.permute.xlu1 %1208  }
  0xf9   :  { %1495 = vst.msk [vmem:[%s2649_s1 + $0x78] sm:$0xff] %vm866_vm6, %v1209_v14  }
  0xfc   :  { %v1186_v15 = vpop.permute.xlu0 %1185  }
  0xfd   :  { %1490 = vst.msk [vmem:[%s2649_s1 + $0x58] sm:$0xff] %vm866_vm6, %v1186_v15  }

// kernel: squeeze.2
= control target key start
LH: loop header
LB: loop body
LE: loop exit
PB: predicated region body
PF: predicated region fallthrough
CT: control target
= control target key end

     0   :  { %vm118_vm0 = vcmask 1043458   ;;  %s158_s6 = smov 3  ;;  %vm123_vm1 = vcmask 1045508   ;;  %vm128_vm2 = vcmask 1047558   ;;  %s161_s9 = smov 12  ;;  %vm3_vm3 = vcmask 261120   ;;  %s2648_s0 = inlined_call_operand.vmem [shape: f32[1,4,16,8,32], index: 0, kind: input, shape index: {}]   ;;  %s2649_s1 = inlined_call_operand.vmem [shape: f32[4,8,512], index: 1, kind: output, shape index: {}]  }
   0x1   :  { %v1268_v0 = vld [vmem:[%s2648_s0 + $0x103] ss:$16 sm:%s158_s6]   ;;  %s166_s10 = smov 48  ;;  %s171_s15 = smov 192  ;;  %v1223_v54 = vld [vmem:[%s2648_s0 + $0x80] ss:$4 sm:$0xff]  }
   0x2   :  { %v1269_v1 = vld [vmem:[%s2648_s0 + $0x103] ss:$16 sm:%s161_s9]   ;;  %s113_s16 = smov 3  ;;  %s116_s21 = smov 12  ;;  %vm132_vm4 = vcmask 1048320   ;;  %vm499_vm5 = vcmask 785920  }
   0x3   :  { %v1270_v2 = vld [vmem:[%s2648_s0 + $0x103] ss:$16 sm:%s166_s10]   ;;  %v164_v3 = vsel %vm118_vm0, %v1269_v1, %v1268_v0  ;;  %s121_s22 = smov 48  ;;  %s126_s27 = smov 192  ;;  %v1226_v0 = vld [vmem:[%s2648_s0 + $0xa0] ss:$4 sm:$0xff]  }
   0x4   :  { %v1271_v4 = vld [vmem:[%s2648_s0 + $0x103] ss:$16 sm:%s171_s15]   ;;  %v169_v6 = vsel %vm123_vm1, %v1270_v2, %v164_v3  ;;  %s181_s28 = smov 3  ;;  %s184_s4 = smov 12  ;;  %vm866_vm6 = vcmask 523520  }
   0x5   :  { %v1259_v5 = vld [vmem:[%s2648_s0 + $0x3] ss:$16 sm:%s113_s16]   ;;  %v174_v9 = vsel %vm128_vm2, %v1271_v4, %v169_v6  ;;  %s189_s5 = smov 48  ;;  %s1499_s6 = smov 96   ;;  %v1229_v6 = vld [vmem:[%s2648_s0 + $0xc0] ss:$4 sm:$0xff]  }
   0x6   :  { %v1260_v7 = vld [vmem:[%s2648_s0 + $0x3] ss:$16 sm:%s116_s21]   ;;  %175 = vrot.lane.b32.xlu1 %v174_v9, %s1499_s6  ;;  %s194_s9 = smov 192  ;;  %s135_s10 = smov 3 }
   0x7   :  { %v1261_v8 = vld [vmem:[%s2648_s0 + $0x3] ss:$16 sm:%s121_s22]   ;;  %v119_v10 = vsel %vm118_vm0, %v1260_v7, %v1259_v5  ;;  %s138_s15 = smov 12  ;;  %s143_s16 = smov 48 }
   0x8   :  { %v1262_v11 = vld [vmem:[%s2648_s0 + $0x3] ss:$16 sm:%s126_s27]   ;;  %v124_v13 = vsel %vm123_vm1, %v1261_v8, %v119_v10  ;;  %s148_s19 = smov 192  ;;  %s227_s20 = smov 3 }
   0x9   :  { %v1273_v12 = vld [vmem:[%s2648_s0 + $0x183] ss:$16 sm:%s181_s28]   ;;  %v129_v15 = vsel %vm128_vm2, %v1262_v11, %v124_v13  ;;  %s230_s25 = smov 12  ;;  %s235_s26 = smov 48  ;;  %v1283_v27 = vld [vmem:[%s2648_s0 + $0x87] ss:$16 sm:%s227_s20]  }
   0xa   :  { %v1274_v14 = vld [vmem:[%s2648_s0 + $0x183] ss:$16 sm:%s184_s4]   ;;  %130 = vrot.lane.b32.xlu0 %v129_v15, %s1499_s6  ;;  %s240_s29 = smov 192  ;;  %s204_s30 = smov 3 }
   0xb   :  { %v187_v16 = vsel %vm118_vm0, %v1274_v14, %v1273_v12  ;;  %v1275_v17 = vld [vmem:[%s2648_s0 + $0x183] ss:$16 sm:%s189_s5]   ;;  %v1284_v28 = vld [vmem:[%s2648_s0 + $0x87] ss:$16 sm:%s230_s25]   ;;  %s207_s7 = smov 12  ;;  %s212_s8 = smov 48 }
   0xc   :  { %v1276_v18 = vld [vmem:[%s2648_s0 + $0x183] ss:$16 sm:%s194_s9]   ;;  %v192_v19 = vsel %vm123_vm1, %v1275_v17, %v187_v16  ;;  %v233_v30 = vsel %vm118_vm0, %v1284_v28, %v1283_v27  ;;  %v1285_v31 = vld [vmem:[%s2648_s0 + $0x87] ss:$16 sm:%s235_s26]   ;;  %s217_s13 = smov 192  ;;  %s276_s17 = smov 12 }
   0xd   :  { %v1263_v20 = vld [vmem:[%s2648_s0 + $0x83] ss:$16 sm:%s135_s10]   ;;  %v197_v21 = vsel %vm128_vm2, %v1276_v18, %v192_v19  ;;  %v1286_v32 = vld [vmem:[%s2648_s0 + $0x87] ss:$16 sm:%s240_s29]   ;;  %v238_v33 = vsel %vm123_vm1, %v1285_v31, %v233_v30  ;;  %s281_s22 = smov 48  ;;  %s286_s23 = smov 192 }
   0xe   :  { %v1264_v22 = vld [vmem:[%s2648_s0 + $0x83] ss:$16 sm:%s138_s15]   ;;  %198 = vrot.lane.b32.xlu1 %v197_v21, %s1499_s6  ;;  %v243_v35 = vsel %vm128_vm2, %v1286_v32, %v238_v33  ;;  %s250_s26 = smov 3  ;;  %s253_s2 = smov 12  ;;  %v1232_v16 = vld [vmem:[%s2648_s0 + $0xe0] ss:$4 sm:$0xff]  }
   0xf   :  { %v1265_v23 = vld [vmem:[%s2648_s0 + $0x83] ss:$16 sm:%s143_s16]   ;;  %v141_v24 = vsel %vm118_vm0, %v1264_v22, %v1263_v20  ;;  %v1278_v34 = vld [vmem:[%s2648_s0 + $0x7] ss:$16 sm:%s204_s30]   ;;  %s273_s16 = smov 3  ;;  %s258_s3 = smov 48 }
  0x10   :  { %v1266_v25 = vld [vmem:[%s2648_s0 + $0x83] ss:$16 sm:%s148_s19]   ;;  %v146_v26 = vsel %vm123_vm1, %v1265_v23, %v141_v24  ;;  %v1279_v36 = vld [vmem:[%s2648_s0 + $0x7] ss:$16 sm:%s207_s7]   ;;  %s263_s9 = smov 192  ;;  %s319_s12 = smov 3 }
  0x11   :  { %v151_v29 = vsel %vm128_vm2, %v1266_v25, %v146_v26  ;;  %v1280_v37 = vld [vmem:[%s2648_s0 + $0x7] ss:$16 sm:%s212_s8]   ;;  %v210_v38 = vsel %vm118_vm0, %v1279_v36, %v1278_v34  ;;  %s327_s18 = smov 48  ;;  %s332_s19 = smov 192  ;;  %v1303_v56 = vld [vmem:[%s2648_s0 + $0x8b] ss:$16 sm:%s319_s12]  }
  0x12   :  { %152 = vrot.lane.b32.xlu0 %v151_v29, %s1499_s6  ;;  %244 = vrot.lane.b32.xlu1 %v243_v35, %s1499_s6  ;;  %v1281_v39 = vld [vmem:[%s2648_s0 + $0x7] ss:$16 sm:%s217_s13]   ;;  %v215_v40 = vsel %vm123_vm1, %v1280_v37, %v210_v38  ;;  %s322_s13 = smov 12  ;;  %s299_s29 = smov 12 }
  0x13   :  { %v1293_v41 = vld [vmem:[%s2648_s0 + $0x187] ss:$16 sm:%s273_s16]   ;;  %v220_v43 = vsel %vm128_vm2, %v1281_v39, %v215_v40  ;;  %v1304_v57 = vld [vmem:[%s2648_s0 + $0x8b] ss:$16 sm:%s322_s13]   ;;  %s304_s30 = smov 48  ;;  %s309_s11 = smov 192 }
  0x14   :  { %v1294_v42 = vld [vmem:[%s2648_s0 + $0x187] ss:$16 sm:%s276_s17]   ;;  %1224 = vst.msk [vmem:[%s2649_s1 + $0x20] ss:$8 sm:$0xf] %vm3_vm3, %v1223_v54   ;;  %v325_v59 = vsel %vm118_vm0, %v1304_v57, %v1303_v56  ;;  %s365_s14 = smov 3 }
  0x15   :  { %v279_v44 = vsel %vm118_vm0, %v1294_v42, %v1293_v41  ;;  %v1295_v45 = vld [vmem:[%s2648_s0 + $0x187] ss:$16 sm:%s281_s22]   ;;  %s296_s22 = smov 3  ;;  %1225 = vst.msk [vmem:[%s2649_s1 + $0x1] ss:$8 sm:$0xf0] %vm3_vm3, %v1223_v54  }
  0x16   :  { %v1296_v46 = vld [vmem:[%s2648_s0 + $0x187] ss:$16 sm:%s286_s23]   ;;  %221 = vrot.lane.b32.xlu0 %v220_v43, %s1499_s6  ;;  %v284_v47 = vsel %vm123_vm1, %v1295_v45, %v279_v44  ;;  %s368_s15 = smov 12  ;;  %s378_s23 = smov 192  ;;  %v2_v31 = vld [vmem:[%s2648_s0] ss:$4 sm:$0xff]  }
  0x17   :  { %v1288_v48 = vld [vmem:[%s2648_s0 + $0x107] ss:$16 sm:%s250_s26]   ;;  %v289_v49 = vsel %vm128_vm2, %v1296_v46, %v284_v47  ;;  %v1305_v60 = vld [vmem:[%s2648_s0 + $0x8b] ss:$16 sm:%s327_s18]   ;;  %s350_s10 = smov 48  ;;  %s396_s16 = smov 48 }
  0x18   :  { %v1289_v50 = vld [vmem:[%s2648_s0 + $0x107] ss:$16 sm:%s253_s2]   ;;  %290 = vrot.lane.b32.xlu1 %v289_v49, %s1499_s6  ;;  %v330_v62 = vsel %vm123_vm1, %v1305_v60, %v325_v59  ;;  %1227 = vst.msk [vmem:[%s2649_s1 + $0x22] ss:$8 sm:$0xf] %vm3_vm3, %v1226_v0   ;;  %s424_s2 = smov 192 }
  0x19   :  { %v1290_v51 = vld [vmem:[%s2648_s0 + $0x107] ss:$16 sm:%s258_s3]   ;;  %v256_v52 = vsel %vm118_vm0, %v1289_v50, %v1288_v48  ;;  %v1306_v61 = vld [vmem:[%s2648_s0 + $0x8b] ss:$16 sm:%s332_s19]   ;;  %s355_s19 = smov 192  ;;  %s401_s21 = smov 192 }
  0x1a   :  { %v1291_v53 = vld [vmem:[%s2648_s0 + $0x107] ss:$16 sm:%s263_s9]   ;;  %v261_v55 = vsel %vm123_vm1, %v1290_v51, %v256_v52  ;;  %v1298_v63 = vld [vmem:[%s2648_s0 + $0xb] ss:$16 sm:%s296_s22]   ;;  %v335_v1 = vsel %vm128_vm2, %v1306_v61, %v330_v62  ;;  %s373_s22 = smov 48  ;;  %s345_s9 = smov 12 }
  0x1b   :  { %v266_v58 = vsel %vm128_vm2, %v1291_v53, %v261_v55  ;;  %v1299_v2 = vld [vmem:[%s2648_s0 + $0xb] ss:$16 sm:%s299_s29]   ;;  %1228 = vst.msk [vmem:[%s2649_s1 + $0x3] ss:$8 sm:$0xf0] %vm3_vm3, %v1226_v0   ;;  %s457_s24 = smov 3 }
  0x1c   :  { %267 = vrot.lane.b32.xlu0 %v266_v58, %s1499_s6  ;;  %v1300_v3 = vld [vmem:[%s2648_s0 + $0xb] ss:$16 sm:%s304_s30]   ;;  %336 = vrot.lane.b32.xlu1 %v335_v1, %s1499_s6  ;;  %v302_v4 = vsel %vm118_vm0, %v1299_v2, %v1298_v63  ;;  %s342_s30 = smov 3  ;;  %s460_s25 = smov 12 }
  0x1d   :  { %v1301_v5 = vld [vmem:[%s2648_s0 + $0xb] ss:$16 sm:%s309_s11]   ;;  %v307_v7 = vsel %vm123_vm1, %v1300_v3, %v302_v4  ;;  %1230 = vst.msk [vmem:[%s2649_s1 + $0x24] ss:$8 sm:$0xf] %vm3_vm3, %v1229_v6   ;;  %s465_s3 = smov 48 }
  0x1e   :  { %v1313_v8 = vld [vmem:[%s2648_s0 + $0x18b] ss:$16 sm:%s365_s14]   ;;  %1231 = vst.msk [vmem:[%s2649_s1 + $0x5] ss:$8 sm:$0xf0] %vm3_vm3, %v1229_v6   ;;  %v312_v10 = vsel %vm128_vm2, %v1301_v5, %v307_v7  ;;  %s470_s4 = smov 192 }
  0x1f   :  { %v1314_v9 = vld [vmem:[%s2648_s0 + $0x18b] ss:$16 sm:%s368_s15]   ;;  %1233 = vst.msk [vmem:[%s2649_s1 + $0x26] ss:$8 sm:$0xf] %vm3_vm3, %v1232_v16   ;;  %s391_s15 = smov 12 }
  0x20   :  { %v371_v11 = vsel %vm118_vm0, %v1314_v9, %v1313_v8  ;;  %v1315_v12 = vld [vmem:[%s2648_s0 + $0x18b] ss:$16 sm:%s373_s22]   ;;  %313 = vrot.lane.b32.xlu0 %v312_v10, %s1499_s6  ;;  %s411_s22 = smov 3  ;;  %1234 = vst.msk [vmem:[%s2649_s1 + $0x7] ss:$8 sm:$0xf0] %vm3_vm3, %v1232_v16  }
  0x21   :  { %v1316_v13 = vld [vmem:[%s2648_s0 + $0x18b] ss:$16 sm:%s378_s23]   ;;  %v376_v14 = vsel %vm123_vm1, %v1315_v12, %v371_v11  ;;  %s414_s23 = smov 12  ;;  %v1323_v23 = vld [vmem:[%s2648_s0 + $0x8f] ss:$16 sm:%s411_s22]   ;;  %s434_s12 = smov 3 }
  0x22   :  { %v1308_v15 = vld [vmem:[%s2648_s0 + $0x10b] ss:$16 sm:%s342_s30]   ;;  %v381_v17 = vsel %vm128_vm2, %v1316_v13, %v376_v14  ;;  %s419_s30 = smov 48  ;;  %v1324_v24 = vld [vmem:[%s2648_s0 + $0x8f] ss:$16 sm:%s414_s23]   ;;  %s442_s20 = smov 48 }
  0x23   :  { %v1309_v18 = vld [vmem:[%s2648_s0 + $0x10b] ss:$16 sm:%s345_s9]   ;;  %382 = vrot.lane.b32.xlu1 %v381_v17, %s1499_s6  ;;  %v417_v26 = vsel %vm118_vm0, %v1324_v24, %v1323_v23  ;;  %4 = vst.msk [vmem:[%s2649_s1] ss:$8 sm:$0xf] %vm3_vm3, %v2_v31   ;;  %s447_s29 = smov 192 }
  0x24   :  { %v1310_v19 = vld [vmem:[%s2648_s0 + $0x10b] ss:$16 sm:%s350_s10]   ;;  %v348_v20 = vsel %vm118_vm0, %v1309_v18, %v1308_v15  ;;  %s388_s10 = smov 3  ;;  %v1325_v27 = vld [vmem:[%s2648_s0 + $0x8f] ss:$16 sm:%s419_s30]   ;;  %s515_s13 = smov 192 }
  0x25   :  { %v1311_v21 = vld [vmem:[%s2648_s0 + $0x10b] ss:$16 sm:%s355_s19]   ;;  %v353_v22 = vsel %vm123_vm1, %v1310_v19, %v348_v20  ;;  %v1326_v28 = vld [vmem:[%s2648_s0 + $0x8f] ss:$16 sm:%s424_s2]   ;;  %v422_v29 = vsel %vm123_vm1, %v1325_v27, %v417_v26  ;;  %s437_s19 = smov 12  ;;  %s483_s27 = smov 12 }
  0x26   :  { %v358_v25 = vsel %vm128_vm2, %v1311_v21, %v353_v22  ;;  %v1318_v30 = vld [vmem:[%s2648_s0 + $0xf] ss:$16 sm:%s388_s10]   ;;  %v427_v32 = vsel %vm128_vm2, %v1326_v28, %v422_v29  ;;  %1213 = vst.msk [vmem:[%s2649_s1 - $0x1f] ss:$8 sm:$0xf0] %vm3_vm3, %v2_v31   ;;  %s488_s28 = smov 48 }
  0x27   :  { %359 = vrot.lane.b32.xlu0 %v358_v25, %s1499_s6  ;;  %v1319_v33 = vld [vmem:[%s2648_s0 + $0xf] ss:$16 sm:%s391_s15]   ;;  %428 = vrot.lane.b32.xlu1 %v427_v32, %s1499_s6  ;;  %s493_s9 = smov 192  ;;  %s548_s11 = smov 3 }
  0x28   :  { %v1320_v34 = vld [vmem:[%s2648_s0 + $0xf] ss:$16 sm:%s396_s16]   ;;  %v394_v35 = vsel %vm118_vm0, %v1319_v33, %v1318_v30  ;;  %v1214_v37 = vld [vmem:[%s2648_s0 + $0x20] ss:$4 sm:$0xff]   ;;  %s528_s7 = smov 12  ;;  %s533_s8 = smov 48 }
  0x29   :  { %v1321_v36 = vld [vmem:[%s2648_s0 + $0xf] ss:$16 sm:%s401_s21]   ;;  %v399_v38 = vsel %vm123_vm1, %v1320_v34, %v394_v35  ;;  %1215 = vst.msk [vmem:[%s2649_s1 + $0x2] ss:$8 sm:$0xf] %vm3_vm3, %v1214_v37   ;;  %s538_s16 = smov 192 }
  0x2a   :  { %v1333_v39 = vld [vmem:[%s2648_s0 + $0x18f] ss:$16 sm:%s457_s24]   ;;  %1216 = vst.msk [vmem:[%s2649_s1 - $0x1d] ss:$8 sm:$0xf0] %vm3_vm3, %v1214_v37   ;;  %v404_v41 = vsel %vm128_vm2, %v1321_v36, %v399_v38  ;;  %s574_s14 = smov 12 }
  0x2b   :  { %v1334_v40 = vld [vmem:[%s2648_s0 + $0x18f] ss:$16 sm:%s460_s25]   ;;  %405 = vrot.lane.b32.xlu0 %v404_v41, %s1499_s6  ;;  %v1217_v47 = vld [vmem:[%s2648_s0 + $0x40] ss:$4 sm:$0xff]   ;;  %s1500_s25 = smov 64   ;;  %s579_s15 = smov 48 }
  0x2c   :  { %v463_v42 = vsel %vm118_vm0, %v1334_v40, %v1333_v39  ;;  %v1335_v43 = vld [vmem:[%s2648_s0 + $0x18f] ss:$16 sm:%s465_s3]   ;;  %s502_s3 = smov 3  ;;  %1218 = vst.msk [vmem:[%s2649_s1 + $0x4] ss:$8 sm:$0xf] %vm3_vm3, %v1217_v47  }
  0x2d   :  { %v1336_v44 = vld [vmem:[%s2648_s0 + $0x18f] ss:$16 sm:%s470_s4]   ;;  %v468_v45 = vsel %vm123_vm1, %v1335_v43, %v463_v42  ;;  %s505_s4 = smov 12  ;;  %1219 = vst.msk [vmem:[%s2649_s1 - $0x1b] ss:$8 sm:$0xf0] %vm3_vm3, %v1217_v47  }
  0x2e   :  { %v1328_v46 = vld [vmem:[%s2648_s0 + $0x10f] ss:$16 sm:%s434_s12]   ;;  %v473_v48 = vsel %vm128_vm2, %v1336_v44, %v468_v45  ;;  %s510_s12 = smov 48  ;;  %v1220_v53 = vld [vmem:[%s2648_s0 + $0x60] ss:$4 sm:$0xff]   ;;  %s584_s24 = smov 192 }
  0x2f   :  { %v1329_v49 = vld [vmem:[%s2648_s0 + $0x10f] ss:$16 sm:%s437_s19]   ;;  %474 = vrot.lane.b32.xlu1 %v473_v48, %s1499_s6  ;;  %1221 = vst.msk [vmem:[%s2649_s1 + $0x6] ss:$8 sm:$0xf] %vm3_vm3, %v1220_v53   ;;  %s556_s19 = smov 48 }
  0x30   :  { %v1330_v50 = vld [vmem:[%s2648_s0 + $0x10f] ss:$16 sm:%s442_s20]   ;;  %v440_v51 = vsel %vm118_vm0, %v1329_v49, %v1328_v46  ;;  %s480_s20 = smov 3  ;;  %v1342_v55 = vld [vmem:[%s2648_s0 + $0x82] ss:$16 sm:%s502_s3]   ;;  %s620_s22 = smov 12 }
  0x31   :  { %v1331_v52 = vld [vmem:[%s2648_s0 + $0x10f] ss:$16 sm:%s447_s29]   ;;  %v445_v54 = vsel %vm123_vm1, %v1330_v50, %v440_v51  ;;  %v1343_v56 = vld [vmem:[%s2648_s0 + $0x82] ss:$16 sm:%s505_s4]   ;;  %s607_s29 = smov 192  ;;  %s625_s23 = smov 48 }
  0x32   :  { %1222 = vst.msk [vmem:[%s2649_s1 - $0x19] ss:$8 sm:$0xf0] %vm3_vm3, %v1220_v53   ;;  %v450_v57 = vsel %vm128_vm2, %v1331_v52, %v445_v54  ;;  %v508_v58 = vsel %vm118_vm0, %v1343_v56, %v1342_v55  ;;  %v1344_v59 = vld [vmem:[%s2648_s0 + $0x82] ss:$16 sm:%s510_s12]   ;;  %s551_s12 = smov 12 }
  0x33   :  { %v1345_v60 = vld [vmem:[%s2648_s0 + $0x82] ss:$16 sm:%s515_s13]   ;;  %451 = vrot.lane.b32.xlu0 %v450_v57, %s1499_s6  ;;  %v513_v61 = vsel %vm123_vm1, %v1344_v59, %v508_v58  ;;  %v1247_v63 = vld [vmem:[%s2648_s0 + $0x180] ss:$4 sm:$0xff]   ;;  %s630_s4 = smov 192  ;;  %s666_s2 = smov 12 }
  0x34   :  { %v1338_v62 = vld [vmem:[%s2648_s0 + $0x2] ss:$16 sm:%s480_s20]   ;;  %v518_v0 = vsel %vm128_vm2, %v1345_v60, %v513_v61  ;;  %s561_s20 = smov 192  ;;  %1248 = vst.msk [vmem:[%s2649_s1 + $0x60] ss:$8 sm:$0xf] %vm3_vm3, %v1247_v63  }
  0x35   :  { %v1339_v1 = vld [vmem:[%s2648_s0 + $0x2] ss:$16 sm:%s483_s27]   ;;  %1249 = vst.msk [vmem:[%s2649_s1 + $0x41] ss:$8 sm:$0xf0] %vm3_vm3, %v1247_v63   ;;  %519 = vrot.lane.b32.xlu1 %v518_v0, %s1500_s25  ;;  %s671_s3 = smov 48 }
  0x36   :  { %v1340_v2 = vld [vmem:[%s2648_s0 + $0x2] ss:$16 sm:%s488_s28]   ;;  %v486_v3 = vsel %vm118_vm0, %v1339_v1, %v1338_v62  ;;  %s525_s28 = smov 3  ;;  %v1250_v5 = vld [vmem:[%s2648_s0 + $0x1a0] ss:$4 sm:$0xff]   ;;  %s740_s21 = smov 48 }
  0x37   :  { %v1341_v4 = vld [vmem:[%s2648_s0 + $0x2] ss:$16 sm:%s493_s9]   ;;  %v491_v6 = vsel %vm123_vm1, %v1340_v2, %v486_v3  ;;  %1251 = vst.msk [vmem:[%s2649_s1 + $0x62] ss:$8 sm:$0xf] %vm3_vm3, %v1250_v5   ;;  %s653_s9 = smov 192 }
  0x38   :  { %v1352_v7 = vld [vmem:[%s2648_s0 + $0x182] ss:$16 sm:%s548_s11]   ;;  %1252 = vst.msk [vmem:[%s2649_s1 + $0x43] ss:$8 sm:$0xf0] %vm3_vm3, %v1250_v5   ;;  %v496_v9 = vsel %vm128_vm2, %v1341_v4, %v491_v6  ;;  %s709_s26 = smov 3 }
  0x39   :  { %v1353_v8 = vld [vmem:[%s2648_s0 + $0x182] ss:$16 sm:%s551_s12]   ;;  %497 = vrot.lane.b32.xlu0 %v496_v9, %s1500_s25  ;;  %v1253_v15 = vld [vmem:[%s2648_s0 + $0x1c0] ss:$4 sm:$0xff]   ;;  %s676_s12 = smov 192  ;;  %s778_s11 = smov 3 }
  0x3a   :  { %v554_v10 = vsel %vm118_vm0, %v1353_v8, %v1352_v7  ;;  %v1354_v11 = vld [vmem:[%s2648_s0 + $0x182] ss:$16 sm:%s556_s19]   ;;  %s594_s19 = smov 3  ;;  %1254 = vst.msk [vmem:[%s2649_s1 + $0x64] ss:$8 sm:$0xf] %vm3_vm3, %v1253_v15  }
  0x3b   :  { %v1355_v12 = vld [vmem:[%s2648_s0 + $0x182] ss:$16 sm:%s561_s20]   ;;  %v559_v13 = vsel %vm123_vm1, %v1354_v11, %v554_v10  ;;  %s597_s20 = smov 12  ;;  %1255 = vst.msk [vmem:[%s2649_s1 + $0x45] ss:$8 sm:$0xf0] %vm3_vm3, %v1253_v15  }
  0x3c   :  { %v1347_v14 = vld [vmem:[%s2648_s0 + $0x102] ss:$16 sm:%s525_s28]   ;;  %v564_v16 = vsel %vm128_vm2, %v1355_v12, %v559_v13  ;;  %s602_s28 = smov 48  ;;  %v1256_v21 = vld [vmem:[%s2648_s0 + $0x1e0] ss:$4 sm:$0xff]   ;;  %s786_s17 = smov 48 }
  0x3d   :  { %v1348_v17 = vld [vmem:[%s2648_s0 + $0x102] ss:$16 sm:%s528_s7]   ;;  %565 = vrot.lane.b32.xlu1 %v564_v16, %s1500_s25  ;;  %1257 = vst.msk [vmem:[%s2649_s1 + $0x66] ss:$8 sm:$0xf] %vm3_vm3, %v1256_v21   ;;  %s791_s18 = smov 192 }
  0x3e   :  { %v1349_v18 = vld [vmem:[%s2648_s0 + $0x102] ss:$16 sm:%s533_s8]   ;;  %v531_v19 = vsel %vm118_vm0, %v1348_v17, %v1347_v14  ;;  %s571_s8 = smov 3  ;;  %v1362_v23 = vld [vmem:[%s2648_s0 + $0x86] ss:$16 sm:%s594_s19]   ;;  %s758_s27 = smov 12 }
  0x3f   :  { %v1350_v20 = vld [vmem:[%s2648_s0 + $0x102] ss:$16 sm:%s538_s16]   ;;  %v536_v22 = vsel %vm123_vm1, %v1349_v18, %v531_v19  ;;  %v1363_v24 = vld [vmem:[%s2648_s0 + $0x86] ss:$16 sm:%s597_s20]   ;;  %s699_s16 = smov 192  ;;  %s832_s13 = smov 48 }
  0x40   :  { %1258 = vst.msk [vmem:[%s2649_s1 + $0x47] ss:$8 sm:$0xf0] %vm3_vm3, %v1256_v21   ;;  %v541_v25 = vsel %vm128_vm2, %v1350_v20, %v536_v22  ;;  %v600_v26 = vsel %vm118_vm0, %v1363_v24, %v1362_v23  ;;  %v1364_v27 = vld [vmem:[%s2648_s0 + $0x86] ss:$16 sm:%s602_s28]   ;;  %s640_s28 = smov 3 }
  0x41   :  { %v1365_v28 = vld [vmem:[%s2648_s0 + $0x86] ss:$16 sm:%s607_s29]   ;;  %542 = vrot.lane.b32.xlu0 %v541_v25, %s1500_s25  ;;  %v605_v29 = vsel %vm123_vm1, %v1364_v27, %v600_v26  ;;  %s643_s29 = smov 12  ;;  %v1235_v31 = vld [vmem:[%s2648_s0 + $0x100] ss:$4 sm:$0xff]   ;;  %s877_s6 = smov 48 }
  0x42   :  { %v1357_v30 = vld [vmem:[%s2648_s0 + $0x6] ss:$16 sm:%s571_s8]   ;;  %v610_v32 = vsel %vm128_vm2, %v1365_v28, %v605_v29  ;;  %s648_s8 = smov 48  ;;  %1236 = vst.msk [vmem:[%s2649_s1 + $0x40] ss:$8 sm:$0xf] %vm3_vm3, %v1235_v31  }
  0x43   :  { %v1358_v33 = vld [vmem:[%s2648_s0 + $0x6] ss:$16 sm:%s574_s14]   ;;  %1237 = vst.msk [vmem:[%s2649_s1 + $0x21] ss:$8 sm:$0xf0] %vm3_vm3, %v1235_v31   ;;  %611 = vrot.lane.b32.xlu1 %v610_v32, %s1500_s25  ;;  %s837_s14 = smov 192 }
  0x44   :  { %v1359_v34 = vld [vmem:[%s2648_s0 + $0x6] ss:$16 sm:%s579_s15]   ;;  %v577_v35 = vsel %vm118_vm0, %v1358_v33, %v1357_v30  ;;  %s617_s15 = smov 3  ;;  %v1238_v37 = vld [vmem:[%s2648_s0 + $0x120] ss:$4 sm:$0xff]   ;;  %s882_s10 = smov 192 }
  0x45   :  { %v1360_v36 = vld [vmem:[%s2648_s0 + $0x6] ss:$16 sm:%s584_s24]   ;;  %v582_v38 = vsel %vm123_vm1, %v1359_v34, %v577_v35  ;;  %1239 = vst.msk [vmem:[%s2649_s1 + $0x42] ss:$8 sm:$0xf] %vm3_vm3, %v1238_v37   ;;  %s855_s19 = smov 48 }
  0x46   :  { %v1372_v39 = vld [vmem:[%s2648_s0 + $0x186] ss:$16 sm:%s640_s28]   ;;  %1240 = vst.msk [vmem:[%s2649_s1 + $0x23] ss:$8 sm:$0xf0] %vm3_vm3, %v1238_v37   ;;  %v587_v41 = vsel %vm128_vm2, %v1360_v36, %v582_v38  ;;  %s763_s28 = smov 48 }
  0x47   :  { %v1373_v40 = vld [vmem:[%s2648_s0 + $0x186] ss:$16 sm:%s643_s29]   ;;  %588 = vrot.lane.b32.xlu0 %v587_v41, %s1500_s25  ;;  %v1241_v47 = vld [vmem:[%s2648_s0 + $0x140] ss:$4 sm:$0xff]   ;;  %s814_s29 = smov 192  ;;  %s860_s24 = smov 192 }
  0x48   :  { %v646_v42 = vsel %vm118_vm0, %v1373_v40, %v1372_v39  ;;  %v1374_v43 = vld [vmem:[%s2648_s0 + $0x186] ss:$16 sm:%s648_s8]   ;;  %s686_s8 = smov 3  ;;  %1242 = vst.msk [vmem:[%s2649_s1 + $0x44] ss:$8 sm:$0xf] %vm3_vm3, %v1241_v47  }
  0x49   :  { %v1375_v44 = vld [vmem:[%s2648_s0 + $0x186] ss:$16 sm:%s653_s9]   ;;  %v651_v45 = vsel %vm123_vm1, %v1374_v43, %v646_v42  ;;  %s689_s9 = smov 12  ;;  %1243 = vst.msk [vmem:[%s2649_s1 + $0x25] ss:$8 sm:$0xf0] %vm3_vm3, %v1241_v47  }
  0x4a   :  { %v1367_v46 = vld [vmem:[%s2648_s0 + $0x106] ss:$16 sm:%s617_s15]   ;;  %v656_v48 = vsel %vm128_vm2, %v1375_v44, %v651_v45  ;;  %s694_s15 = smov 48  ;;  %v1244_v53 = vld [vmem:[%s2648_s0 + $0x160] ss:$4 sm:$0xff]   ;;  %s928_s5 = smov 192 }
  0x4b   :  { %v1368_v49 = vld [vmem:[%s2648_s0 + $0x106] ss:$16 sm:%s620_s22]   ;;  %657 = vrot.lane.b32.xlu1 %v656_v48, %s1500_s25  ;;  %1245 = vst.msk [vmem:[%s2649_s1 + $0x46] ss:$8 sm:$0xf] %vm3_vm3, %v1244_v53   ;;  %s745_s22 = smov 192 }
  0x4c   :  { %v1369_v50 = vld [vmem:[%s2648_s0 + $0x106] ss:$16 sm:%s625_s23]   ;;  %v623_v51 = vsel %vm118_vm0, %v1368_v49, %v1367_v46  ;;  %s663_s23 = smov 3  ;;  %v1382_v55 = vld [vmem:[%s2648_s0 + $0x8a] ss:$16 sm:%s686_s8]   ;;  %s824_s8 = smov 3 }
  0x4d   :  { %v1370_v52 = vld [vmem:[%s2648_s0 + $0x106] ss:$16 sm:%s630_s4]   ;;  %v628_v54 = vsel %vm123_vm1, %v1369_v50, %v623_v51  ;;  %v1383_v56 = vld [vmem:[%s2648_s0 + $0x8a] ss:$16 sm:%s689_s9]   ;;  %s722_s9 = smov 192  ;;  %s768_s4 = smov 192 }
  0x4e   :  { %1246 = vst.msk [vmem:[%s2649_s1 + $0x27] ss:$8 sm:$0xf0] %vm3_vm3, %v1244_v53   ;;  %v633_v57 = vsel %vm128_vm2, %v1370_v52, %v628_v54  ;;  %v692_v58 = vsel %vm118_vm0, %v1383_v56, %v1382_v55  ;;  %v1384_v59 = vld [vmem:[%s2648_s0 + $0x8a] ss:$16 sm:%s694_s15]   ;;  %s732_s15 = smov 3 }
  0x4f   :  { %v1385_v60 = vld [vmem:[%s2648_s0 + $0x8a] ss:$16 sm:%s699_s16]   ;;  %634 = vrot.lane.b32.xlu0 %v633_v57, %s1500_s25  ;;  %v697_v61 = vsel %vm123_vm1, %v1384_v59, %v692_v58  ;;  %s735_s16 = smov 12  ;;  %s1501_s7 = smov 32  }
  0x50   :  { %v1377_v62 = vld [vmem:[%s2648_s0 + $0xa] ss:$16 sm:%s663_s23]   ;;  %v702_v63 = vsel %vm128_vm2, %v1385_v60, %v697_v61  ;;  %v1402_v19 = vld [vmem:[%s2648_s0 + $0x8e] ss:$16 sm:%s778_s11]   ;;  %s809_s23 = smov 48  ;;  %s905_s20 = smov 192 }
  0x51   :  { %v1378_v0 = vld [vmem:[%s2648_s0 + $0xa] ss:$16 sm:%s666_s2]   ;;  %703 = vrot.lane.b32.xlu1 %v702_v63, %s1500_s25  ;;  %s712_s2 = smov 12  ;;  %s974_s30 = smov 192 }
  0x52   :  { %v1379_v1 = vld [vmem:[%s2648_s0 + $0xa] ss:$16 sm:%s671_s3]   ;;  %v669_v2 = vsel %vm118_vm0, %v1378_v0, %v1377_v62  ;;  %s717_s3 = smov 48  ;;  %v1404_v23 = vld [vmem:[%s2648_s0 + $0x8e] ss:$16 sm:%s786_s17]   ;;  %s801_s17 = smov 3 }
  0x53   :  { %v1380_v3 = vld [vmem:[%s2648_s0 + $0xa] ss:$16 sm:%s676_s12]   ;;  %v674_v4 = vsel %vm123_vm1, %v1379_v1, %v669_v2  ;;  %s781_s12 = smov 12  ;;  %v1405_v24 = vld [vmem:[%s2648_s0 + $0x8e] ss:$16 sm:%s791_s18]   ;;  %s850_s18 = smov 12 }
  0x54   :  { %v1392_v5 = vld [vmem:[%s2648_s0 + $0x18a] ss:$16 sm:%s732_s15]   ;;  %v679_v7 = vsel %vm128_vm2, %v1380_v3, %v674_v4  ;;  %v1403_v20 = vld [vmem:[%s2648_s0 + $0x8e] ss:$16 sm:%s781_s12]   ;;  %s900_s15 = smov 48  ;;  %s946_s11 = smov 48 }
  0x55   :  { %v1393_v6 = vld [vmem:[%s2648_s0 + $0x18a] ss:$16 sm:%s735_s16]   ;;  %680 = vrot.lane.b32.xlu0 %v679_v7, %s1500_s25  ;;  %v784_v22 = vsel %vm118_vm0, %v1403_v20, %v1402_v19  ;;  %s951_s16 = smov 192  ;;  %s997_s12 = smov 192 }
  0x56   :  { %v738_v8 = vsel %vm118_vm0, %v1393_v6, %v1392_v5  ;;  %v1394_v9 = vld [vmem:[%s2648_s0 + $0x18a] ss:$16 sm:%s740_s21]   ;;  %s755_s21 = smov 3  ;;  %v789_v25 = vsel %vm123_vm1, %v1404_v23, %v784_v22  ;;  %v1398_v28 = vld [vmem:[%s2648_s0 + $0xe] ss:$16 sm:%s758_s27]   ;;  %s915_s27 = smov 3 }
  0x57   :  { %v1395_v10 = vld [vmem:[%s2648_s0 + $0x18a] ss:$16 sm:%s745_s22]   ;;  %v743_v11 = vsel %vm123_vm1, %v1394_v9, %v738_v8  ;;  %v1397_v26 = vld [vmem:[%s2648_s0 + $0xe] ss:$16 sm:%s755_s21]   ;;  %v794_v27 = vsel %vm128_vm2, %v1405_v24, %v789_v25  ;;  %s804_s22 = smov 12  ;;  %s1061_s21 = smov 48 }
  0x58   :  { %v1387_v12 = vld [vmem:[%s2648_s0 + $0x10a] ss:$16 sm:%s709_s26]   ;;  %v748_v13 = vsel %vm128_vm2, %v1395_v10, %v743_v11  ;;  %v1399_v29 = vld [vmem:[%s2648_s0 + $0xe] ss:$16 sm:%s763_s28]   ;;  %v761_v30 = vsel %vm118_vm0, %v1398_v28, %v1397_v26  ;;  %s918_s28 = smov 12  ;;  %s1020_s26 = smov 192 }
  0x59   :  { %v1388_v14 = vld [vmem:[%s2648_s0 + $0x10a] ss:$16 sm:%s712_s2]   ;;  %749 = vrot.lane.b32.xlu1 %v748_v13, %s1500_s25  ;;  %v766_v32 = vsel %vm123_vm1, %v1399_v29, %v761_v30  ;;  %s1038_s2 = smov 48 }
  0x5a   :  { %v1389_v15 = vld [vmem:[%s2648_s0 + $0x10a] ss:$16 sm:%s717_s3]   ;;  %v715_v16 = vsel %vm118_vm0, %v1388_v14, %v1387_v12  ;;  %v1400_v31 = vld [vmem:[%s2648_s0 + $0xe] ss:$16 sm:%s768_s4]   ;;  %s869_s3 = smov 3  ;;  %s872_s4 = smov 12 }
  0x5b   :  { %v1390_v17 = vld [vmem:[%s2648_s0 + $0x10a] ss:$16 sm:%s722_s9]   ;;  %v720_v18 = vsel %vm123_vm1, %v1389_v15, %v715_v16  ;;  %s827_s9 = smov 12  ;;  %v1412_v33 = vld [vmem:[%s2648_s0 + $0x18e] ss:$16 sm:%s824_s8]   ;;  %v771_v35 = vsel %vm128_vm2, %v1400_v31, %v766_v32  ;;  %s992_s8 = smov 48 }
  0x5c   :  { %v725_v21 = vsel %vm128_vm2, %v1390_v17, %v720_v18  ;;  %v1413_v34 = vld [vmem:[%s2648_s0 + $0x18e] ss:$16 sm:%s827_s9]   ;;  %v1421_v47 = vld [vmem:[%s2648_s0 + $0x81] ss:$16 sm:%s869_s3]   ;;  %s1043_s9 = smov 192  ;;  %s1089_s3 = smov 192 }
  0x5d   :  { %726 = vrot.lane.b32.xlu0 %v725_v21, %s1500_s25  ;;  %795 = vrot.lane.b32.xlu1 %v794_v27, %s1500_s25  ;;  %v830_v36 = vsel %vm118_vm0, %v1413_v34, %v1412_v33  ;;  %v1414_v37 = vld [vmem:[%s2648_s0 + $0x18e] ss:$16 sm:%s832_s13]   ;;  %s847_s13 = smov 3 }
  0x5e   :  { %v1415_v38 = vld [vmem:[%s2648_s0 + $0x18e] ss:$16 sm:%s837_s14]   ;;  %v835_v39 = vsel %vm123_vm1, %v1414_v37, %v830_v36  ;;  %v1422_v48 = vld [vmem:[%s2648_s0 + $0x81] ss:$16 sm:%s872_s4]   ;;  %s923_s4 = smov 48  ;;  %s895_s14 = smov 12 }
  0x5f   :  { %v1407_v40 = vld [vmem:[%s2648_s0 + $0x10e] ss:$16 sm:%s801_s17]   ;;  %v840_v41 = vsel %vm128_vm2, %v1415_v38, %v835_v39  ;;  %v875_v50 = vsel %vm118_vm0, %v1422_v48, %v1421_v47  ;;  %v1423_v51 = vld [vmem:[%s2648_s0 + $0x81] ss:$16 sm:%s877_s6]   ;;  %s892_s6 = smov 3  ;;  %s1107_s17 = smov 48 }
  0x60   :  { %v1408_v42 = vld [vmem:[%s2648_s0 + $0x10e] ss:$16 sm:%s804_s22]   ;;  %v1424_v52 = vld [vmem:[%s2648_s0 + $0x81] ss:$16 sm:%s882_s10]   ;;  %v880_v53 = vsel %vm123_vm1, %v1423_v51, %v875_v50  ;;  %s941_s10 = smov 12  ;;  %s1066_s22 = smov 192 }
  0x61   :  { %772 = vrot.lane.b32.xlu0 %v771_v35, %s1500_s25  ;;  %v1409_v43 = vld [vmem:[%s2648_s0 + $0x10e] ss:$16 sm:%s809_s23]   ;;  %841 = vrot.lane.b32.xlu1 %v840_v41, %s1500_s25  ;;  %v807_v44 = vsel %vm118_vm0, %v1408_v42, %v1407_v40  ;;  %v885_v55 = vsel %vm128_vm2, %v1424_v52, %v880_v53  ;;  %s961_s23 = smov 3 }
  0x62   :  { %v1410_v45 = vld [vmem:[%s2648_s0 + $0x10e] ss:$16 sm:%s814_s29]   ;;  %v812_v46 = vsel %vm123_vm1, %v1409_v43, %v807_v44  ;;  %v1417_v54 = vld [vmem:[%s2648_s0 + $0x1] ss:$16 sm:%s847_s13]   ;;  %s969_s29 = smov 48  ;;  %s1153_s13 = smov 48 }
  0x63   :  { %v817_v49 = vsel %vm128_vm2, %v1410_v45, %v812_v46  ;;  %v1418_v56 = vld [vmem:[%s2648_s0 + $0x1] ss:$16 sm:%s850_s18]   ;;  %v1441_v11 = vld [vmem:[%s2648_s0 + $0x85] ss:$16 sm:%s961_s23]   ;;  %s1112_s18 = smov 192  ;;  %s1130_s23 = smov 48 }
  0x64   :  { %v1419_v57 = vld [vmem:[%s2648_s0 + $0x1] ss:$16 sm:%s855_s19]   ;;  %v853_v58 = vsel %vm118_vm0, %v1418_v56, %v1417_v54  ;;  %v1443_v15 = vld [vmem:[%s2648_s0 + $0x85] ss:$16 sm:%s969_s29]   ;;  %s1007_s19 = smov 3  ;;  %s984_s29 = smov 3 }
  0x65   :  { %818 = vrot.lane.b32.xlu0 %v817_v49, %s1500_s25  ;;  %886 = vrot.lane.b32.xlu1 %v885_v55, %s1501_s7  ;;  %v1420_v59 = vld [vmem:[%s2648_s0 + $0x1] ss:$16 sm:%s860_s24]   ;;  %v858_v60 = vsel %vm123_vm1, %v1419_v57, %v853_v58  ;;  %s964_s24 = smov 12  ;;  %s1015_s25 = smov 48 }
  0x66   :  { %v1431_v61 = vld [vmem:[%s2648_s0 + $0x181] ss:$16 sm:%s915_s27]   ;;  %v863_v63 = vsel %vm128_vm2, %v1420_v59, %v858_v60  ;;  %v1442_v12 = vld [vmem:[%s2648_s0 + $0x85] ss:$16 sm:%s964_s24]   ;;  %s1084_s27 = smov 48  ;;  %s1181_s24 = smov 192 }
  0x67   :  { %v1432_v62 = vld [vmem:[%s2648_s0 + $0x181] ss:$16 sm:%s918_s28]   ;;  %v967_v14 = vsel %vm118_vm0, %v1442_v12, %v1441_v11  ;;  %v1444_v16 = vld [vmem:[%s2648_s0 + $0x85] ss:$16 sm:%s974_s30]   ;;  %s1033_s30 = smov 12  ;;  %s1135_s28 = smov 192 }
  0x68   :  { %v921_v0 = vsel %vm118_vm0, %v1432_v62, %v1431_v61  ;;  %v1433_v1 = vld [vmem:[%s2648_s0 + $0x181] ss:$16 sm:%s923_s4]   ;;  %s938_s4 = smov 3  ;;  %v972_v17 = vsel %vm123_vm1, %v1443_v15, %v967_v14  ;;  %v1437_v20 = vld [vmem:[%s2648_s0 + $0x5] ss:$16 sm:%s941_s10]   ;;  %s1204_s10 = smov 192 }
  0x69   :  { %v1434_v2 = vld [vmem:[%s2648_s0 + $0x181] ss:$16 sm:%s928_s5]   ;;  %864 = vrot.lane.b32.xlu0 %v863_v63, %s1501_s7  ;;  %v926_v3 = vsel %vm123_vm1, %v1433_v1, %v921_v0  ;;  %v977_v19 = vsel %vm128_vm2, %v1444_v16, %v972_v17  ;;  %s987_s5 = smov 12 }
  0x6a   :  { %v1426_v4 = vld [vmem:[%s2648_s0 + $0x101] ss:$16 sm:%s892_s6]   ;;  %v931_v5 = vsel %vm128_vm2, %v1434_v2, %v926_v3  ;;  %v1436_v18 = vld [vmem:[%s2648_s0 + $0x5] ss:$16 sm:%s938_s4]   ;;  %s1199_s6 = smov 48 }
  0x6b   :  { %v1427_v6 = vld [vmem:[%s2648_s0 + $0x101] ss:$16 sm:%s895_s14]   ;;  %932 = vrot.lane.b32.xlu1 %v931_v5, %s1501_s7  ;;  %v944_v22 = vsel %vm118_vm0, %v1437_v20, %v1436_v18  ;;  %s1158_s14 = smov 192 }
  0x6c   :  { %v1428_v7 = vld [vmem:[%s2648_s0 + $0x101] ss:$16 sm:%s900_s15]   ;;  %v898_v8 = vsel %vm118_vm0, %v1427_v6, %v1426_v4  ;;  %v1438_v21 = vld [vmem:[%s2648_s0 + $0x5] ss:$16 sm:%s946_s11]   ;;  %s1053_s15 = smov 3  ;;  %s1099_s11 = smov 3 }
  0x6d   :  { %v1429_v9 = vld [vmem:[%s2648_s0 + $0x101] ss:$16 sm:%s905_s20]   ;;  %v903_v10 = vsel %vm123_vm1, %v1428_v7, %v898_v8  ;;  %s1010_s20 = smov 12  ;;  %v1439_v23 = vld [vmem:[%s2648_s0 + $0x5] ss:$16 sm:%s951_s16]   ;;  %v949_v24 = vsel %vm123_vm1, %v1438_v21, %v944_v22  ;;  %s1056_s16 = smov 12 }
  0x6e   :  { %v908_v13 = vsel %vm128_vm2, %v1429_v9, %v903_v10  ;;  %v1451_v25 = vld [vmem:[%s2648_s0 + $0x185] ss:$16 sm:%s1007_s19]   ;;  %v954_v27 = vsel %vm128_vm2, %v1439_v23, %v949_v24  ;;  %v1461_v39 = vld [vmem:[%s2648_s0 + $0x89] ss:$16 sm:%s1053_s15]   ;;  %s1176_s19 = smov 48 }
  0x6f   :  { %909 = vrot.lane.b32.xlu0 %v908_v13, %s1501_s7  ;;  %978 = vrot.lane.b32.xlu1 %v977_v19, %s1501_s7  ;;  %v1452_v26 = vld [vmem:[%s2648_s0 + $0x185] ss:$16 sm:%s1010_s20]  }
  0x70   :  { %v1013_v28 = vsel %vm118_vm0, %v1452_v26, %v1451_v25  ;;  %v1453_v29 = vld [vmem:[%s2648_s0 + $0x185] ss:$16 sm:%s1015_s25]   ;;  %s1030_s25 = smov 3  ;;  %v1462_v40 = vld [vmem:[%s2648_s0 + $0x89] ss:$16 sm:%s1056_s16]  }
  0x71   :  { %v1454_v30 = vld [vmem:[%s2648_s0 + $0x185] ss:$16 sm:%s1020_s26]   ;;  %v1018_v31 = vsel %vm123_vm1, %v1453_v29, %v1013_v28  ;;  %v1059_v42 = vsel %vm118_vm0, %v1462_v40, %v1461_v39  ;;  %v1463_v43 = vld [vmem:[%s2648_s0 + $0x89] ss:$16 sm:%s1061_s21]   ;;  %s1076_s21 = smov 3  ;;  %s1079_s26 = smov 12 }
  0x72   :  { %v1446_v32 = vld [vmem:[%s2648_s0 + $0x105] ss:$16 sm:%s984_s29]   ;;  %v1023_v33 = vsel %vm128_vm2, %v1454_v30, %v1018_v31  ;;  %v1464_v44 = vld [vmem:[%s2648_s0 + $0x89] ss:$16 sm:%s1066_s22]   ;;  %v1064_v45 = vsel %vm123_vm1, %v1463_v43, %v1059_v42  ;;  %s1125_s22 = smov 12 }
  0x73   :  { %955 = vrot.lane.b32.xlu0 %v954_v27, %s1501_s7  ;;  %v1447_v34 = vld [vmem:[%s2648_s0 + $0x105] ss:$16 sm:%s987_s5]   ;;  %1024 = vrot.lane.b32.xlu1 %v1023_v33, %s1501_s7  ;;  %v1069_v47 = vsel %vm128_vm2, %v1464_v44, %v1064_v45 }
  0x74   :  { %v1448_v35 = vld [vmem:[%s2648_s0 + $0x105] ss:$16 sm:%s992_s8]   ;;  %v990_v36 = vsel %vm118_vm0, %v1447_v34, %v1446_v32  ;;  %v1456_v46 = vld [vmem:[%s2648_s0 + $0x9] ss:$16 sm:%s1030_s25]   ;;  %s1145_s8 = smov 3 }
  0x75   :  { %v1449_v37 = vld [vmem:[%s2648_s0 + $0x105] ss:$16 sm:%s997_s12]   ;;  %v995_v38 = vsel %vm123_vm1, %v1448_v35, %v990_v36  ;;  %s1102_s12 = smov 12  ;;  %v1457_v48 = vld [vmem:[%s2648_s0 + $0x9] ss:$16 sm:%s1033_s30]  }
  0x76   :  { %v1000_v41 = vsel %vm128_vm2, %v1449_v37, %v995_v38  ;;  %v1458_v49 = vld [vmem:[%s2648_s0 + $0x9] ss:$16 sm:%s1038_s2]   ;;  %v1036_v50 = vsel %vm118_vm0, %v1457_v48, %v1456_v46  ;;  %v1481_v3 = vld [vmem:[%s2648_s0 + $0x8d] ss:$16 sm:%s1145_s8]   ;;  %s1191_s2 = smov 3 }
  0x77   :  { %1001 = vrot.lane.b32.xlu0 %v1000_v41, %s1501_s7  ;;  %1070 = vrot.lane.b32.xlu1 %v1069_v47, %s1501_s7  ;;  %v1459_v51 = vld [vmem:[%s2648_s0 + $0x9] ss:$16 sm:%s1043_s9]   ;;  %v1041_v52 = vsel %vm123_vm1, %v1458_v49, %v1036_v50  ;;  %s1148_s9 = smov 12 }
  0x78   :  { %v1471_v53 = vld [vmem:[%s2648_s0 + $0x189] ss:$16 sm:%s1099_s11]   ;;  %v1046_v55 = vsel %vm128_vm2, %v1459_v51, %v1041_v52  ;;  %v1482_v4 = vld [vmem:[%s2648_s0 + $0x8d] ss:$16 sm:%s1148_s9]   ;;  %v176_v30 = vpop.permute.xlu1 %175  }
  0x79   :  { %v1472_v54 = vld [vmem:[%s2648_s0 + $0x189] ss:$16 sm:%s1102_s12]   ;;  %v1151_v6 = vsel %vm118_vm0, %v1482_v4, %v1481_v3  ;;  %v1483_v7 = vld [vmem:[%s2648_s0 + $0x8d] ss:$16 sm:%s1153_s13]   ;;  %s1168_s13 = smov 3 }
  0x7a   :  { %v1105_v56 = vsel %vm118_vm0, %v1472_v54, %v1471_v53  ;;  %v1473_v57 = vld [vmem:[%s2648_s0 + $0x189] ss:$16 sm:%s1107_s17]   ;;  %s1122_s17 = smov 3  ;;  %v1484_v8 = vld [vmem:[%s2648_s0 + $0x8d] ss:$16 sm:%s1158_s14]   ;;  %v1156_v9 = vsel %vm123_vm1, %v1483_v7, %v1151_v6 }
  0x7b   :  { %v1474_v58 = vld [vmem:[%s2648_s0 + $0x189] ss:$16 sm:%s1112_s18]   ;;  %1047 = vrot.lane.b32.xlu0 %v1046_v55, %s1501_s7  ;;  %v1110_v59 = vsel %vm123_vm1, %v1473_v57, %v1105_v56  ;;  %v1161_v11 = vsel %vm128_vm2, %v1484_v8, %v1156_v9  ;;  %s1171_s18 = smov 12  ;;  %1272 = vst.msk [vmem:[%s2649_s1 + $0x40] sm:$0xff] %vm132_vm4, %v176_v30  }
  0x7c   :  { %v1466_v60 = vld [vmem:[%s2648_s0 + $0x109] ss:$16 sm:%s1076_s21]   ;;  %v1115_v61 = vsel %vm128_vm2, %v1474_v58, %v1110_v59  ;;  %v1476_v10 = vld [vmem:[%s2648_s0 + $0xd] ss:$16 sm:%s1122_s17]   ;;  %v131_v33 = vpop.permute.xlu0 %130  }
  0x7d   :  { %v1467_v62 = vld [vmem:[%s2648_s0 + $0x109] ss:$16 sm:%s1079_s26]   ;;  %1116 = vrot.lane.b32.xlu1 %v1115_v61, %s1501_s7  ;;  %133 = vst.msk [vmem:[%s2649_s1] sm:$0xff] %vm132_vm4, %v131_v33  }
  0x7e   :  { %v1468_v63 = vld [vmem:[%s2648_s0 + $0x109] ss:$16 sm:%s1084_s27]   ;;  %v1082_v0 = vsel %vm118_vm0, %v1467_v62, %v1466_v60  ;;  %v1477_v12 = vld [vmem:[%s2648_s0 + $0xd] ss:$16 sm:%s1125_s22]  }
  0x7f   :  { %v1469_v1 = vld [vmem:[%s2648_s0 + $0x109] ss:$16 sm:%s1089_s3]   ;;  %v1087_v2 = vsel %vm123_vm1, %v1468_v63, %v1082_v0  ;;  %s1194_s3 = smov 12  ;;  %v1478_v13 = vld [vmem:[%s2648_s0 + $0xd] ss:$16 sm:%s1130_s23]   ;;  %v1128_v14 = vsel %vm118_vm0, %v1477_v12, %v1476_v10 }
  0x80   :  { %v1092_v5 = vsel %vm128_vm2, %v1469_v1, %v1087_v2  ;;  %v1479_v15 = vld [vmem:[%s2648_s0 + $0xd] ss:$16 sm:%s1135_s28]   ;;  %v1133_v16 = vsel %vm123_vm1, %v1478_v13, %v1128_v14  ;;  %v199_v34 = vpop.permute.xlu1 %198  }
  0x81   :  { %1093 = vrot.lane.b32.xlu0 %v1092_v5, %s1501_s7  ;;  %1162 = vrot.lane.b32.xlu1 %v1161_v11, %s1501_s7  ;;  %v1491_v17 = vld [vmem:[%s2648_s0 + $0x18d] ss:$16 sm:%s1191_s2]   ;;  %v1138_v19 = vsel %vm128_vm2, %v1479_v15, %v1133_v16 }
  0x82   :  { %v1492_v18 = vld [vmem:[%s2648_s0 + $0x18d] ss:$16 sm:%s1194_s3]   ;;  %1277 = vst.msk [vmem:[%s2649_s1 + $0x60] sm:$0xff] %vm132_vm4, %v199_v34  }
  0x83   :  { %v1197_v20 = vsel %vm118_vm0, %v1492_v18, %v1491_v17  ;;  %v1493_v21 = vld [vmem:[%s2648_s0 + $0x18d] ss:$16 sm:%s1199_s6]  }
  0x84   :  { %v1494_v22 = vld [vmem:[%s2648_s0 + $0x18d] ss:$16 sm:%s1204_s10]   ;;  %v1202_v23 = vsel %vm123_vm1, %v1493_v21, %v1197_v20  ;;  %v153_v35 = vpop.permute.xlu0 %152   ;;  %v245_v36 = vpop.permute.xlu1 %244  }
  0x85   :  { %1139 = vrot.lane.b32.xlu0 %v1138_v19, %s1501_s7  ;;  %v1486_v24 = vld [vmem:[%s2648_s0 + $0x10d] ss:$16 sm:%s1168_s13]   ;;  %v1207_v25 = vsel %vm128_vm2, %v1494_v22, %v1202_v23  ;;  %1267 = vst.msk [vmem:[%s2649_s1 + $0x20] sm:$0xff] %vm132_vm4, %v153_v35  }
  0x86   :  { %v1487_v26 = vld [vmem:[%s2648_s0 + $0x10d] ss:$16 sm:%s1171_s18]   ;;  %1208 = vrot.lane.b32.xlu1 %v1207_v25, %s1501_s7  ;;  %1287 = vst.msk [vmem:[%s2649_s1 + $0x28] sm:$0xff] %vm132_vm4, %v245_v36  }
  0x87   :  { %v1488_v27 = vld [vmem:[%s2648_s0 + $0x10d] ss:$16 sm:%s1176_s19]   ;;  %v1174_v28 = vsel %vm118_vm0, %v1487_v26, %v1486_v24 }
  0x88   :  { %v1489_v29 = vld [vmem:[%s2648_s0 + $0x10d] ss:$16 sm:%s1181_s24]   ;;  %v1179_v31 = vsel %vm123_vm1, %v1488_v27, %v1174_v28  ;;  %v222_v37 = vpop.permute.xlu0 %221  }
  0x89   :  { %v1184_v32 = vsel %vm128_vm2, %v1489_v29, %v1179_v31  ;;  %1282 = vst.msk [vmem:[%s2649_s1 + $0x8] sm:$0xff] %vm132_vm4, %v222_v37  }
  0x8a   :  { %1185 = vrot.lane.b32.xlu0 %v1184_v32, %s1501_s7  ;;  %v291_v38 = vpop.permute.xlu1 %290  }
  0x8b   :  { %1297 = vst.msk [vmem:[%s2649_s1 + $0x68] sm:$0xff] %vm132_vm4, %v291_v38  }
  0x8e   :  { %v268_v39 = vpop.permute.xlu0 %267   ;;  %v337_v40 = vpop.permute.xlu1 %336  }
  0x8f   :  { %1292 = vst.msk [vmem:[%s2649_s1 + $0x48] sm:$0xff] %vm132_vm4, %v268_v39   ;;  %1307 = vst.msk [vmem:[%s2649_s1 + $0x30] sm:$0xff] %vm132_vm4, %v337_v40  }
  0x92   :  { %v314_v41 = vpop.permute.xlu0 %313  }
  0x93   :  { %1302 = vst.msk [vmem:[%s2649_s1 + $0x10] sm:$0xff] %vm132_vm4, %v314_v41  }
  0x95   :  { %v383_v42 = vpop.permute.xlu1 %382  }
  0x96   :  { %1317 = vst.msk [vmem:[%s2649_s1 + $0x70] sm:$0xff] %vm132_vm4, %v383_v42  }
  0x99   :  { %v360_v43 = vpop.permute.xlu0 %359   ;;  %v429_v44 = vpop.permute.xlu1 %428  }
  0x9a   :  { %1312 = vst.msk [vmem:[%s2649_s1 + $0x50] sm:$0xff] %vm132_vm4, %v360_v43   ;;  %1327 = vst.msk [vmem:[%s2649_s1 + $0x38] sm:$0xff] %vm132_vm4, %v429_v44  }
  0x9d   :  { %v406_v45 = vpop.permute.xlu0 %405  }
  0x9e   :  { %1322 = vst.msk [vmem:[%s2649_s1 + $0x18] sm:$0xff] %vm132_vm4, %v406_v45  }
  0xa1   :  { %v475_v46 = vpop.permute.xlu1 %474  }
  0xa2   :  { %1337 = vst.msk [vmem:[%s2649_s1 + $0x78] sm:$0xff] %vm132_vm4, %v475_v46  }
  0xa5   :  { %v452_v47 = vpop.permute.xlu0 %451  }
  0xa6   :  { %1332 = vst.msk [vmem:[%s2649_s1 + $0x58] sm:$0xff] %vm132_vm4, %v452_v47  }
  0xa7   :  { %v520_v48 = vpop.permute.xlu1 %519  }
  0xa8   :  { %1346 = vst.msk [vmem:[%s2649_s1 + $0x20] sm:$0xff] %vm499_vm5, %v520_v48  }
  0xab   :  { %v498_v49 = vpop.permute.xlu0 %497  }
  0xac   :  { %500 = vst.msk [vmem:[%s2649_s1] sm:$0xff] %vm499_vm5, %v498_v49  }
  0xaf   :  { %v566_v50 = vpop.permute.xlu1 %565  }
  0xb0   :  { %1356 = vst.msk [vmem:[%s2649_s1 + $0x60] sm:$0xff] %vm499_vm5, %v566_v50  }
  0xb3   :  { %v543_v51 = vpop.permute.xlu0 %542  }
  0xb4   :  { %1351 = vst.msk [vmem:[%s2649_s1 + $0x40] sm:$0xff] %vm499_vm5, %v543_v51  }
  0xb5   :  { %v612_v52 = vpop.permute.xlu1 %611  }
  0xb6   :  { %1366 = vst.msk [vmem:[%s2649_s1 + $0x28] sm:$0xff] %vm499_vm5, %v612_v52  }
  0xb9   :  { %v589_v53 = vpop.permute.xlu0 %588  }
  0xba   :  { %1361 = vst.msk [vmem:[%s2649_s1 + $0x8] sm:$0xff] %vm499_vm5, %v589_v53  }
  0xbd   :  { %v658_v54 = vpop.permute.xlu1 %657  }
  0xbe   :  { %1376 = vst.msk [vmem:[%s2649_s1 + $0x68] sm:$0xff] %vm499_vm5, %v658_v54  }
  0xc1   :  { %v635_v55 = vpop.permute.xlu0 %634  }
  0xc2   :  { %1371 = vst.msk [vmem:[%s2649_s1 + $0x48] sm:$0xff] %vm499_vm5, %v635_v55  }
  0xc3   :  { %v704_v56 = vpop.permute.xlu1 %703  }
  0xc4   :  { %1386 = vst.msk [vmem:[%s2649_s1 + $0x30] sm:$0xff] %vm499_vm5, %v704_v56  }
  0xc7   :  { %v681_v57 = vpop.permute.xlu0 %680  }
  0xc8   :  { %1381 = vst.msk [vmem:[%s2649_s1 + $0x10] sm:$0xff] %vm499_vm5, %v681_v57  }
  0xcb   :  { %v750_v58 = vpop.permute.xlu1 %749  }
  0xcc   :  { %1396 = vst.msk [vmem:[%s2649_s1 + $0x70] sm:$0xff] %vm499_vm5, %v750_v58  }
  0xcf   :  { %v727_v59 = vpop.permute.xlu0 %726   ;;  %v796_v60 = vpop.permute.xlu1 %795  }
  0xd0   :  { %1391 = vst.msk [vmem:[%s2649_s1 + $0x50] sm:$0xff] %vm499_vm5, %v727_v59   ;;  %1406 = vst.msk [vmem:[%s2649_s1 + $0x38] sm:$0xff] %vm499_vm5, %v796_v60  }
  0xd3   :  { %v773_v61 = vpop.permute.xlu0 %772   ;;  %v842_v62 = vpop.permute.xlu1 %841  }
  0xd4   :  { %1401 = vst.msk [vmem:[%s2649_s1 + $0x18] sm:$0xff] %vm499_vm5, %v773_v61   ;;  %1416 = vst.msk [vmem:[%s2649_s1 + $0x78] sm:$0xff] %vm499_vm5, %v842_v62  }
  0xd7   :  { %v819_v63 = vpop.permute.xlu0 %818   ;;  %v887_v0 = vpop.permute.xlu1 %886  }
  0xd8   :  { %1411 = vst.msk [vmem:[%s2649_s1 + $0x58] sm:$0xff] %vm499_vm5, %v819_v63  }
  0xd9   :  { %1425 = vst.msk [vmem:[%s2649_s1 + $0x20] sm:$0xff] %vm866_vm6, %v887_v0  }
  0xdb   :  { %v865_v1 = vpop.permute.xlu0 %864  }
  0xdc   :  { %867 = vst.msk [vmem:[%s2649_s1] sm:$0xff] %vm866_vm6, %v865_v1  }
  0xdd   :  { %v933_v2 = vpop.permute.xlu1 %932  }
  0xde   :  { %1435 = vst.msk [vmem:[%s2649_s1 + $0x60] sm:$0xff] %vm866_vm6, %v933_v2  }
  0xe1   :  { %v910_v3 = vpop.permute.xlu0 %909   ;;  %v979_v4 = vpop.permute.xlu1 %978  }
  0xe2   :  { %1430 = vst.msk [vmem:[%s2649_s1 + $0x40] sm:$0xff] %vm866_vm6, %v910_v3   ;;  %1445 = vst.msk [vmem:[%s2649_s1 + $0x28] sm:$0xff] %vm866_vm6, %v979_v4  }
  0xe5   :  { %v956_v5 = vpop.permute.xlu0 %955   ;;  %v1025_v6 = vpop.permute.xlu1 %1024  }
  0xe6   :  { %1440 = vst.msk [vmem:[%s2649_s1 + $0x8] sm:$0xff] %vm866_vm6, %v956_v5   ;;  %1455 = vst.msk [vmem:[%s2649_s1 + $0x68] sm:$0xff] %vm866_vm6, %v1025_v6  }
  0xe9   :  { %v1002_v7 = vpop.permute.xlu0 %1001   ;;  %v1071_v8 = vpop.permute.xlu1 %1070  }
  0xea   :  { %1450 = vst.msk [vmem:[%s2649_s1 + $0x48] sm:$0xff] %vm866_vm6, %v1002_v7   ;;  %1465 = vst.msk [vmem:[%s2649_s1 + $0x30] sm:$0xff] %vm866_vm6, %v1071_v8  }
  0xed   :  { %v1048_v9 = vpop.permute.xlu0 %1047  }
  0xee   :  { %1460 = vst.msk [vmem:[%s2649_s1 + $0x10] sm:$0xff] %vm866_vm6, %v1048_v9  }
  0xef   :  { %v1117_v10 = vpop.permute.xlu1 %1116  }
  0xf0   :  { %1475 = vst.msk [vmem:[%s2649_s1 + $0x70] sm:$0xff] %vm866_vm6, %v1117_v10  }
  0xf3   :  { %v1094_v11 = vpop.permute.xlu0 %1093   ;;  %v1163_v12 = vpop.permute.xlu1 %1162  }
  0xf4   :  { %1470 = vst.msk [vmem:[%s2649_s1 + $0x50] sm:$0xff] %vm866_vm6, %v1094_v11   ;;  %1485 = vst.msk [vmem:[%s2649_s1 + $0x38] sm:$0xff] %vm866_vm6, %v1163_v12  }
  0xf7   :  { %v1140_v13 = vpop.permute.xlu0 %1139  }
  0xf8   :  { %1480 = vst.msk [vmem:[%s2649_s1 + $0x18] sm:$0xff] %vm866_vm6, %v1140_v13   ;;  %v1209_v14 = vpop.permute.xlu1 %1208  }
  0xf9   :  { %1495 = vst.msk [vmem:[%s2649_s1 + $0x78] sm:$0xff] %vm866_vm6, %v1209_v14  }
  0xfc   :  { %v1186_v15 = vpop.permute.xlu0 %1185  }
  0xfd   :  { %1490 = vst.msk [vmem:[%s2649_s1 + $0x58] sm:$0xff] %vm866_vm6, %v1186_v15  }

// kernel: gtlayer_forward.1
= control target key start
LH: loop header
LB: loop body
LE: loop exit
PB: predicated region body
PF: predicated region fallthrough
CT: control target
= control target key end

     0   :  { %s815_s1 = inlined_call_operand.vmem [shape: f32[4,8,512], index: 1, kind: input, shape index: {}]   ;;  %s816_s3 = inlined_call_operand.vmem [shape: f32[4,8,512], index: 3, kind: input, shape index: {}]   ;;  %s817_s0 = inlined_call_operand.vmem [shape: f32[4,8,512], index: 0, kind: input, shape index: {}]   ;;  %s818_s4 = inlined_call_operand.vmem [shape: f32[8,512], index: 4, kind: output, shape index: {0}]   ;;  %s819_s2 = inlined_call_operand.vmem [shape: f32[4,8,512], index: 2, kind: input, shape index: {}]   ;;  %s820_s5 = inlined_call_operand.vmem [shape: f32[8,512], index: 5, kind: output, shape index: {1}]  }
   0x1   :  { %v19_v0 = vld [vmem:[%s815_s1] sm:$0xff]  ;;  %v20_v5 = vld [vmem:[%s815_s1 + $0x8] sm:$0xff]  ;;  %v21_v12 = vld [vmem:[%s815_s1 + $0x10] sm:$0xff] }
   0x2   :  { %v23_v1 = vld [vmem:[%s815_s1 + $0x20] sm:$0xff]  ;;  %v24_v7 = vld [vmem:[%s815_s1 + $0x28] sm:$0xff]  ;;  %v25_v13 = vld [vmem:[%s815_s1 + $0x30] sm:$0xff] }
   0x3   :  { %v27_v2 = vld [vmem:[%s815_s1 + $0x40] sm:$0xff]  ;;  %v35_v3 = vmax.f32 %v19_v0, %v23_v1  ;;  %v28_v8 = vld [vmem:[%s815_s1 + $0x48] sm:$0xff]  ;;  %v38_v9 = vmax.f32 %v20_v5, %v24_v7  ;;  %v29_v15 = vld [vmem:[%s815_s1 + $0x50] sm:$0xff]  ;;  %v41_v16 = vmax.f32 %v21_v12, %v25_v13 }
   0x4   :  { %v31_v4 = vld [vmem:[%s815_s1 + $0x60] sm:$0xff]  ;;  %v32_v11 = vld [vmem:[%s815_s1 + $0x68] sm:$0xff]  ;;  %v33_v21 = vld [vmem:[%s815_s1 + $0x70] sm:$0xff] }
   0x5   :  { %v36_v6 = vmax.f32 %v35_v3, %v27_v2  ;;  %v39_v14 = vmax.f32 %v38_v9, %v28_v8  ;;  %v42_v23 = vmax.f32 %v41_v16, %v29_v15  ;;  %v22_v24 = vld [vmem:[%s815_s1 + $0x18] sm:$0xff]  ;;  %v175_v39 = vld [vmem:[%s816_s3] sm:$0xff]  ;;  %v509_v53 = vld [vmem:[%s816_s3 + $0x8] sm:$0xff] }
   0x6   :  { %v26_v25 = vld [vmem:[%s815_s1 + $0x38] sm:$0xff]  ;;  %v179_v46 = vld [vmem:[%s816_s3 + $0x20] sm:$0xff]  ;;  %v514_v57 = vld [vmem:[%s816_s3 + $0x28] sm:$0xff] }
   0x7   :  { %v37_v10 = vmax.f32 %v36_v6, %v31_v4  ;;  %v40_v22 = vmax.f32 %v39_v14, %v32_v11  ;;  %v30_v26 = vld [vmem:[%s815_s1 + $0x58] sm:$0xff]  ;;  %v44_v30 = vmax.f32 %v22_v24, %v26_v25  ;;  %v43_v36 = vmax.f32 %v42_v23, %v33_v21  ;;  %v183_v51 = vld [vmem:[%s816_s3 + $0x40] sm:$0xff]  ;;  %v522_v62 = vld [vmem:[%s816_s3 + $0x48] sm:$0xff] }
   0x8   :  { %v34_v37 = vld [vmem:[%s815_s1 + $0x78] sm:$0xff]  ;;  %v191_v52 = vmax.f32 %v175_v39, %v179_v46  ;;  %v187_v61 = vld [vmem:[%s816_s3 + $0x60] sm:$0xff]  ;;  %v537_v14 = vld [vmem:[%s816_s3 + $0x10] sm:$0xff] }
   0x9   :  { %v47_v17 = vsub.f32 %v19_v0, %v37_v10  ;;  %v51_v18 = vsub.f32 %v23_v1, %v37_v10  ;;  %v55_v19 = vsub.f32 %v27_v2, %v37_v10  ;;  %v59_v20 = vsub.f32 %v31_v4, %v37_v10 }
   0xa   :  { %v48_v32 = vsub.f32 %v20_v5, %v40_v22  ;;  %v52_v33 = vsub.f32 %v24_v7, %v40_v22  ;;  %v56_v34 = vsub.f32 %v28_v8, %v40_v22  ;;  %v60_v35 = vsub.f32 %v32_v11, %v40_v22  ;;  %v188_v5 = vld [vmem:[%s816_s3 + $0x68] sm:$0xff] }
   0xb   :  { %v63_v27 = vmul.f32 1.442695, %v47_v17  ;;  %v71_v28 = vmul.f32 1.442695, %v51_v18  ;;  %v79_v29 = vmul.f32 1.442695, %v55_v19  ;;  %v45_v38 = vmax.f32 %v44_v30, %v30_v26 }
   0xc   :  { %v87_v31 = vmul.f32 1.442695, %v59_v20  ;;  %v65_v40 = vmul.f32 1.442695, %v48_v32  ;;  %v73_v41 = vmul.f32 1.442695, %v52_v33  ;;  %v49_v44 = vsub.f32 %v21_v12, %v43_v36 }
   0xd   :  { %339 = vpow2.f32 %v63_v27  ;;  %v81_v42 = vmul.f32 1.442695, %v56_v34  ;;  %v89_v43 = vmul.f32 1.442695, %v60_v35  ;;  %v53_v45 = vsub.f32 %v25_v13, %v43_v36  ;;  %v566_v32 = vld [vmem:[%s816_s3 + $0x18] sm:$0xff] }
   0xe   :  { %341 = vpow2.f32 %v71_v28  ;;  %v57_v47 = vsub.f32 %v29_v15, %v43_v36  ;;  %v61_v48 = vsub.f32 %v33_v21, %v43_v36  ;;  %v46_v49 = vmax.f32 %v45_v38, %v34_v37  ;;  %v542_v15 = vld [vmem:[%s816_s3 + $0x30] sm:$0xff]  ;;  %v571_v33 = vld [vmem:[%s816_s3 + $0x38] sm:$0xff] }
   0xf   :  { %343 = vpow2.f32 %v79_v29  ;;  %v67_v50 = vmul.f32 1.442695, %v49_v44  ;;  %v75_v54 = vmul.f32 1.442695, %v53_v45  ;;  %v192_v0 = vmax.f32 %v191_v52, %v183_v51  ;;  %v589_v45 = vld [vmem:[%s816_s3 + $0x58] sm:$0xff] }
  0x10   :  { %345 = vpow2.f32 %v87_v31  ;;  %v83_v55 = vmul.f32 1.442695, %v57_v47  ;;  %v50_v56 = vsub.f32 %v22_v24, %v46_v49  ;;  %v54_v58 = vsub.f32 %v26_v25, %v46_v49  ;;  %v185_v31 = vld [vmem:[%s816_s3 + $0x50] sm:$0xff] }
  0x11   :  { %347 = vpow2.f32 %v65_v40  ;;  %v58_v59 = vsub.f32 %v30_v26, %v46_v49  ;;  %v62_v60 = vsub.f32 %v34_v37, %v46_v49  ;;  %v91_v63 = vmul.f32 1.442695, %v61_v48 }
  0x12   :  { %349 = vpow2.f32 %v73_v41  ;;  %v194_v1 = vmax.f32 %v509_v53, %v514_v57  ;;  %v69_v2 = vmul.f32 1.442695, %v50_v56  ;;  %v77_v3 = vmul.f32 1.442695, %v54_v58  ;;  %v189_v41 = vld [vmem:[%s816_s3 + $0x70] sm:$0xff] }
  0x13   :  { %351 = vpow2.f32 %v81_v42  ;;  %v193_v4 = vmax.f32 %v192_v0, %v187_v61  ;;  %v85_v8 = vmul.f32 1.442695, %v58_v59  ;;  %v93_v9 = vmul.f32 1.442695, %v62_v60  ;;  %v613_v0 = vld [vmem:[%s816_s3 + $0x78] sm:$0xff] }
  0x14   :  { %353 = vpow2.f32 %v89_v43  ;;  %v195_v6 = vmax.f32 %v194_v1, %v522_v62  ;;  %v197_v26 = vmax.f32 %v537_v14, %v542_v15 }
  0x15   :  { %355 = vpow2.f32 %v67_v50  ;;  %v203_v11 = vsub.f32 %v175_v39, %v193_v4  ;;  %v207_v12 = vsub.f32 %v179_v46, %v193_v4  ;;  %v211_v13 = vsub.f32 %v183_v51, %v193_v4 }
  0x16   :  { %357 = vpow2.f32 %v75_v54  ;;  %v215_v18 = vsub.f32 %v187_v61, %v193_v4  ;;  %v196_v19 = vmax.f32 %v195_v6, %v188_v5  ;;  %v198_v44 = vmax.f32 %v197_v26, %v185_v31 }
  0x17   :  { %v530_v7 = vpop.eup %339  ;;  %359 = vpow2.f32 %v83_v55  ;;  %v219_v21 = vmul.f32 1.442695, %v203_v11  ;;  %v227_v22 = vmul.f32 1.442695, %v207_v12  ;;  %v235_v28 = vmul.f32 1.442695, %v211_v13 }
  0x18   :  { %v532_v10 = vpop.eup %341  ;;  %361 = vpow2.f32 %v91_v63  ;;  %v204_v25 = vsub.f32 %v509_v53, %v196_v19  ;;  %v208_v29 = vsub.f32 %v514_v57, %v196_v19  ;;  %v212_v30 = vsub.f32 %v522_v62, %v196_v19 }
  0x19   :  { %v544_v16 = vpop.eup %343  ;;  %v95_v17 = vadd.f32 %v532_v10, %v530_v7  ;;  %363 = vpow2.f32 %v69_v2  ;;  %v243_v37 = vmul.f32 1.442695, %v215_v18  ;;  %v216_v39 = vsub.f32 %v188_v5, %v196_v19  ;;  %v135_v18 = vld [vmem:[%s817_s0 + $0x40] sm:$0xff] }
  0x1a   :  { %v548_v20 = vpop.eup %345  ;;  %365 = vpow2.f32 %v77_v3  ;;  %v221_v40 = vmul.f32 1.442695, %v204_v25  ;;  %v200_v46 = vmax.f32 %v566_v32, %v571_v33  ;;  %v229_v48 = vmul.f32 1.442695, %v208_v29 }
  0x1b   :  { %v550_v23 = vpop.eup %347  ;;  %v96_v24 = vadd.f32 %v544_v16, %v95_v17  ;;  %367 = vpow2.f32 %v85_v8  ;;  %v237_v49 = vmul.f32 1.442695, %v212_v30  ;;  %v199_v53 = vmax.f32 %v198_v44, %v189_v41  ;;  %v131_v17 = vld [vmem:[%s817_s0 + $0x20] sm:$0xff] }
  0x1c   :  { %v556_v27 = vpop.eup %349  ;;  %369 = vpow2.f32 %v93_v9  ;;  %v245_v55 = vmul.f32 1.442695, %v216_v39  ;;  %v201_v56 = vmax.f32 %v200_v46, %v589_v45  ;;  %v139_v30 = vld [vmem:[%s817_s0 + $0x60] sm:$0xff] }
  0x1d   :  { %v573_v34 = vpop.eup %351  ;;  %v97_v35 = vadd.f32 %v548_v20, %v96_v24  ;;  %v98_v36 = vadd.f32 %v556_v27, %v550_v23  ;;  %371 = vpow2.f32 %v219_v21  ;;  %v205_v59 = vsub.f32 %v537_v14, %v199_v53 }
  0x1e   :  { %v578_v38 = vpop.eup %353  ;;  %373 = vpow2.f32 %v227_v22  ;;  %v209_v60 = vsub.f32 %v542_v15, %v199_v53  ;;  %v213_v62 = vsub.f32 %v185_v31, %v199_v53  ;;  %v217_v63 = vsub.f32 %v189_v41, %v199_v53  ;;  %v127_v15 = vld [vmem:[%s817_s0] sm:$0xff]  ;;  %v140_v53 = vld [vmem:[%s817_s0 + $0x68] sm:$0xff] }
  0x1f   :  { %v583_v42 = vpop.eup %355  ;;  %375 = vrcp.f32 %v97_v35  ;;  %v99_v43 = vadd.f32 %v573_v34, %v98_v36  ;;  %v223_v4 = vmul.f32 1.442695, %v205_v59  ;;  %v626_v11 = vmax.f32 %v201_v56, %v613_v0 }
  0x20   :  { %v593_v47 = vpop.eup %357  ;;  %377 = vpow2.f32 %v235_v28  ;;  %v231_v6 = vmul.f32 1.442695, %v209_v60  ;;  %v239_v13 = vmul.f32 1.442695, %v213_v62  ;;  %v247_v22 = vmul.f32 1.442695, %v217_v63 }
  0x21   :  { %v595_v50 = vpop.eup %359  ;;  %v100_v51 = vadd.f32 %v578_v38, %v99_v43  ;;  %v101_v52 = vadd.f32 %v593_v47, %v583_v42  ;;  %379 = vpow2.f32 %v243_v37  ;;  %v206_v36 = vsub.f32 %v566_v32, %v626_v11  ;;  %v128_v43 = vld [vmem:[%s817_s0 + $0x8] sm:$0xff] }
  0x22   :  { %v600_v54 = vpop.eup %361  ;;  %381 = vpow2.f32 %v221_v40  ;;  %v214_v39 = vsub.f32 %v589_v45, %v626_v11  ;;  %v132_v32 = vld [vmem:[%s817_s0 + $0x28] sm:$0xff]  ;;  %v218_v45 = vsub.f32 %v613_v0, %v626_v11 }
  0x23   :  { %v603_v57 = vpop.eup %363  ;;  %383 = vrcp.f32 %v100_v51  ;;  %v102_v58 = vadd.f32 %v595_v50, %v101_v52  ;;  %v225_v59 = vmul.f32 1.442695, %v206_v36 }
  0x24   :  { %v608_v61 = vpop.eup %365  ;;  %385 = vpow2.f32 %v229_v48 }
  0x25   :  { %v615_v1 = vpop.eup %367  ;;  %v103_v2 = vadd.f32 %v600_v54, %v102_v58  ;;  %v104_v3 = vadd.f32 %v608_v61, %v603_v57  ;;  %387 = vpow2.f32 %v237_v49 }
  0x26   :  { %v620_v5 = vpop.eup %369  ;;  %389 = vpow2.f32 %v245_v55 }
  0x27   :  { %v622_v8 = vpop.eup %371  ;;  %391 = vrcp.f32 %v103_v2  ;;  %v105_v9 = vadd.f32 %v615_v1, %v104_v3  ;;  %v129_v2 = vld [vmem:[%s817_s0 + $0x10] sm:$0xff] }
  0x28   :  { %v628_v12 = vpop.eup %373  ;;  %393 = vpow2.f32 %v223_v4 }
  0x29   :  { %v376_v14 = vpop.eup %375  ;;  %v106_v19 = vadd.f32 %v620_v5, %v105_v9  ;;  %v251_v21 = vadd.f32 %v628_v12, %v622_v8  ;;  %395 = vpow2.f32 %v231_v6 }
  0x2a   :  { %v642_v24 = vpop.eup %377  ;;  %v108_v25 = vmul.f32 %v376_v14, %v530_v7  ;;  %v115_v26 = vmul.f32 %v376_v14, %v532_v10  ;;  %v119_v28 = vmul.f32 %v376_v14, %v544_v16  ;;  %v123_v29 = vmul.f32 %v376_v14, %v548_v20 }
  0x2b   :  { %v651_v31 = vpop.eup %379  ;;  %397 = vrcp.f32 %v106_v19  ;;  %v252_v35 = vadd.f32 %v642_v24, %v251_v21  ;;  %v210_v7 = vsub.f32 %v571_v33, %v626_v11  ;;  %v136_v33 = vld [vmem:[%s817_s0 + $0x48] sm:$0xff] }
  0x2c   :  { %v658_v10 = vpop.eup %381  ;;  %v143_v16 = vmul.f32 %v127_v15, %v108_v25  ;;  %v147_v37 = vmul.f32 %v131_v17, %v115_v26  ;;  %v151_v20 = vmul.f32 %v135_v18, %v119_v28  ;;  %v155_v41 = vmul.f32 %v139_v30, %v123_v29  ;;  %v137_v15 = vld [vmem:[%s817_s0 + $0x50] sm:$0xff] }
  0x2d   :  { %v384_v40 = vpop.eup %383  ;;  %v253_v44 = vadd.f32 %v651_v31, %v252_v35  ;;  %399 = vpow2.f32 %v239_v13  ;;  %v233_v4 = vmul.f32 1.442695, %v210_v7  ;;  %v141_v17 = vld [vmem:[%s817_s0 + $0x70] sm:$0xff]  ;;  %v241_v35 = vmul.f32 1.442695, %v214_v39 }
  0x2e   :  { %v674_v46 = vpop.eup %385  ;;  %v159_v48 = vadd.f32 %v147_v37, %v143_v16  ;;  %v110_v49 = vmul.f32 %v384_v40, %v550_v23  ;;  %v116_v51 = vmul.f32 %v384_v40, %v556_v27  ;;  %v120_v52 = vmul.f32 %v384_v40, %v573_v34 }
  0x2f   :  { %v682_v55 = vpop.eup %387  ;;  %v124_v56 = vmul.f32 %v384_v40, %v578_v38  ;;  %401 = vrcp.f32 %v253_v44  ;;  %v254_v58 = vadd.f32 %v674_v46, %v658_v10  ;;  %v133_v38 = vld [vmem:[%s817_s0 + $0x30] sm:$0xff]  ;;  %v142_v40 = vld [vmem:[%s817_s0 + $0x78] sm:$0xff] }
  0x30   :  { %v687_v60 = vpop.eup %389  ;;  %v160_v23 = vadd.f32 %v159_v48, %v151_v20  ;;  %v144_v62 = vmul.f32 %v128_v43, %v110_v49  ;;  %v148_v27 = vmul.f32 %v132_v32, %v116_v51  ;;  %v152_v63 = vmul.f32 %v136_v33, %v120_v52  ;;  %v138_v20 = vld [vmem:[%s817_s0 + $0x58] sm:$0xff] }
  0x31   :  { %v392_v34 = vpop.eup %391  ;;  %v156_v0 = vmul.f32 %v140_v53, %v124_v56  ;;  %v255_v3 = vadd.f32 %v682_v55, %v254_v58  ;;  %403 = vpow2.f32 %v247_v22  ;;  %v249_v32 = vmul.f32 1.442695, %v218_v45  ;;  %v291_v58 = vld [vmem:[%s819_s2 + $0x40] sm:$0xff] }
  0x32   :  { %v696_v6 = vpop.eup %393  ;;  %v161_v9 = vadd.f32 %v160_v23, %v155_v41  ;;  %v162_v11 = vadd.f32 %v148_v27, %v144_v62  ;;  %v112_v13 = vmul.f32 %v392_v34, %v583_v42  ;;  %v117_v14 = vmul.f32 %v392_v34, %v593_v47  ;;  %v295_v27 = vld [vmem:[%s819_s2 + $0x60] sm:$0xff] }
  0x33   :  { %v706_v18 = vpop.eup %395  ;;  %v121_v19 = vmul.f32 %v392_v34, %v595_v50  ;;  %v125_v21 = vmul.f32 %v392_v34, %v600_v54  ;;  %v256_v22 = vadd.f32 %v687_v60, %v255_v3  ;;  %405 = vpow2.f32 %v225_v59  ;;  %v130_v50 = vld [vmem:[%s817_s0 + $0x18] sm:$0xff] }
  0x34   :  { %171 = vst [vmem:[%s818_s4] sm:$0xff] %v161_v9  ;;  %v163_v42 = vadd.f32 %v162_v11, %v152_v63  ;;  %v145_v47 = vmul.f32 %v129_v2, %v112_v13  ;;  %v149_v25 = vmul.f32 %v133_v38, %v117_v14  ;;  %v257_v26 = vadd.f32 %v706_v18, %v696_v6  ;;  %v134_v54 = vld [vmem:[%s817_s0 + $0x38] sm:$0xff]  ;;  %v288_v9 = vld [vmem:[%s819_s2 + $0x28] sm:$0xff] }
  0x35   :  { %v398_v28 = vpop.eup %397  ;;  %v153_v29 = vmul.f32 %v137_v15, %v121_v19  ;;  %v157_v30 = vmul.f32 %v141_v17, %v125_v21  ;;  %407 = vrcp.f32 %v256_v22  ;;  %v292_v11 = vld [vmem:[%s819_s2 + $0x48] sm:$0xff] }
  0x36   :  { %v164_v36 = vadd.f32 %v163_v42, %v156_v0  ;;  %v165_v7 = vadd.f32 %v149_v25, %v145_v47  ;;  %v114_v16 = vmul.f32 %v398_v28, %v603_v57  ;;  %v118_v37 = vmul.f32 %v398_v28, %v608_v61  ;;  %v296_v22 = vld [vmem:[%s819_s2 + $0x68] sm:$0xff] }
  0x37   :  { %v730_v41 = vpop.eup %399  ;;  %v122_v43 = vmul.f32 %v398_v28, %v615_v1  ;;  %v126_v39 = vmul.f32 %v398_v28, %v620_v5  ;;  %409 = vpow2.f32 %v233_v4  ;;  %v283_v1 = vld [vmem:[%s819_s2] sm:$0xff]  ;;  %v284_v4 = vld [vmem:[%s819_s2 + $0x8] sm:$0xff] }
  0x38   :  { %172 = vst [vmem:[%s818_s4 + $0x8] sm:$0xff] %v164_v36  ;;  %v166_v57 = vadd.f32 %v165_v7, %v153_v29  ;;  %v146_v61 = vmul.f32 %v130_v50, %v114_v16  ;;  %v150_v33 = vmul.f32 %v134_v54, %v118_v37  ;;  %v258_v44 = vadd.f32 %v730_v41, %v257_v26  ;;  %v287_v5 = vld [vmem:[%s819_s2 + $0x20] sm:$0xff]  ;;  %v285_v36 = vld [vmem:[%s819_s2 + $0x10] sm:$0xff] }
  0x39   :  { %v402_v48 = vpop.eup %401  ;;  %v154_v49 = vmul.f32 %v138_v20, %v122_v43  ;;  %v158_v51 = vmul.f32 %v142_v40, %v126_v39  ;;  %411 = vpow2.f32 %v241_v35  ;;  %v289_v7 = vld [vmem:[%s819_s2 + $0x30] sm:$0xff] }
  0x3a   :  { %v167_v45 = vadd.f32 %v166_v57, %v157_v30  ;;  %v168_v52 = vadd.f32 %v150_v33, %v146_v61  ;;  %v264_v53 = vmul.f32 %v402_v48, %v622_v8  ;;  %v271_v56 = vmul.f32 %v402_v48, %v628_v12  ;;  %v293_v16 = vld [vmem:[%s819_s2 + $0x50] sm:$0xff] }
  0x3b   :  { %v404_v59 = vpop.eup %403  ;;  %v275_v23 = vmul.f32 %v402_v48, %v642_v24  ;;  %v279_v62 = vmul.f32 %v402_v48, %v651_v31  ;;  %413 = vpow2.f32 %v249_v32  ;;  %v297_v39 = vld [vmem:[%s819_s2 + $0x70] sm:$0xff] }
  0x3c   :  { %173 = vst [vmem:[%s818_s4 + $0x10] sm:$0xff] %v167_v45  ;;  %v169_v8 = vadd.f32 %v168_v52, %v154_v49  ;;  %v299_v12 = vmul.f32 %v283_v1, %v264_v53  ;;  %v303_v63 = vmul.f32 %v287_v5, %v271_v56  ;;  %v259_v34 = vadd.f32 %v404_v59, %v258_v44  ;;  %v290_v49 = vld [vmem:[%s819_s2 + $0x38] sm:$0xff] }
  0x3d   :  { %v406_v0 = vpop.eup %405  ;;  %v307_v2 = vmul.f32 %v291_v58, %v275_v23  ;;  %v311_v3 = vmul.f32 %v295_v27, %v279_v62  ;;  %v298_v53 = vld [vmem:[%s819_s2 + $0x78] sm:$0xff] }
  0x3e   :  { %v170_v38 = vadd.f32 %v169_v8, %v158_v51  ;;  %v315_v24 = vadd.f32 %v303_v63, %v299_v12  ;;  %415 = vrcp.f32 %v259_v34  ;;  %v294_v51 = vld [vmem:[%s819_s2 + $0x58] sm:$0xff] }
  0x3f   :  { %v408_v31 = vpop.eup %407 }
  0x40   :  { %174 = vst [vmem:[%s818_s4 + $0x18] sm:$0xff] %v170_v38  ;;  %v316_v13 = vadd.f32 %v315_v24, %v307_v2  ;;  %v266_v14 = vmul.f32 %v408_v31, %v658_v10  ;;  %v272_v15 = vmul.f32 %v408_v31, %v674_v46  ;;  %v276_v17 = vmul.f32 %v408_v31, %v682_v55 }
  0x41   :  { %v410_v19 = vpop.eup %409  ;;  %v280_v21 = vmul.f32 %v408_v31, %v687_v60 }
  0x42   :  { %v317_v42 = vadd.f32 %v316_v13, %v311_v3  ;;  %v300_v47 = vmul.f32 %v284_v4, %v266_v14  ;;  %v304_v25 = vmul.f32 %v288_v9, %v272_v15  ;;  %v308_v26 = vmul.f32 %v292_v11, %v276_v17 }
  0x43   :  { %v412_v28 = vpop.eup %411  ;;  %v260_v29 = vadd.f32 %v410_v19, %v406_v0  ;;  %v312_v10 = vmul.f32 %v296_v22, %v280_v21 }
  0x44   :  { %327 = vst [vmem:[%s820_s5] sm:$0xff] %v317_v42  ;;  %v318_v46 = vadd.f32 %v304_v25, %v300_v47 }
  0x45   :  { %v414_v55 = vpop.eup %413  ;;  %v261_v30 = vadd.f32 %v412_v28, %v260_v29 }
  0x46   :  { %v319_v50 = vadd.f32 %v318_v46, %v308_v26 }
  0x47   :  { %v262_v60 = vadd.f32 %v414_v55, %v261_v30 }
  0x48   :  { %v416_v54 = vpop.eup %415  ;;  %v320_v35 = vadd.f32 %v319_v50, %v312_v10 }
  0x49   :  { %v268_v37 = vmul.f32 %v416_v54, %v696_v6  ;;  %v273_v20 = vmul.f32 %v416_v54, %v706_v18  ;;  %v277_v40 = vmul.f32 %v416_v54, %v730_v41  ;;  %v281_v43 = vmul.f32 %v416_v54, %v404_v59  ;;  %v286_v41 = vld [vmem:[%s819_s2 + $0x18] sm:$0xff] }
  0x4a   :  { %328 = vst [vmem:[%s820_s5 + $0x8] sm:$0xff] %v320_v35  ;;  %417 = vrcp.f32 %v262_v60 }
  0x4b   :  { %v301_v32 = vmul.f32 %v285_v36, %v268_v37  ;;  %v305_v57 = vmul.f32 %v289_v7, %v273_v20  ;;  %v309_v61 = vmul.f32 %v293_v16, %v277_v40  ;;  %v313_v33 = vmul.f32 %v297_v39, %v281_v43 }
  0x4d   :  { %v321_v44 = vadd.f32 %v305_v57, %v301_v32 }
  0x4f   :  { %v322_v6 = vadd.f32 %v321_v44, %v309_v61 }
  0x51   :  { %v323_v48 = vadd.f32 %v322_v6, %v313_v33 }
  0x53   :  { %329 = vst [vmem:[%s820_s5 + $0x10] sm:$0xff] %v323_v48 }
  0x54   :  { %v418_v18 = vpop.eup %417 }
  0x55   :  { %v270_v1 = vmul.f32 %v418_v18, %v406_v0  ;;  %v274_v5 = vmul.f32 %v418_v18, %v410_v19  ;;  %v278_v45 = vmul.f32 %v418_v18, %v412_v28  ;;  %v282_v52 = vmul.f32 %v418_v18, %v414_v55 }
  0x57   :  { %v302_v56 = vmul.f32 %v286_v41, %v270_v1  ;;  %v306_v58 = vmul.f32 %v290_v49, %v274_v5  ;;  %v310_v59 = vmul.f32 %v294_v51, %v278_v45  ;;  %v314_v23 = vmul.f32 %v298_v53, %v282_v52 }
  0x59   :  { %v324_v62 = vadd.f32 %v306_v58, %v302_v56 }
  0x5b   :  { %v325_v27 = vadd.f32 %v324_v62, %v310_v59 }
  0x5d   :  { %v326_v8 = vadd.f32 %v325_v27, %v314_v23 }
  0x5f   :  { %330 = vst [vmem:[%s820_s5 + $0x18] sm:$0xff] %v326_v8 }

</bundles_post_ra>
